<compile_context>
chip_gen: v5e
topology: v5e:2x2
jax: 0.10.0
libtpu: 0.0.40
codegen_flags: <defaults>
</compile_context>

<pallas_src>
import jax
import jax.numpy as jnp
from jax.experimental import pallas as pl
from jax.experimental.pallas import tpu as pltpu
import numpy as np


def _double_unshuffle_kernel(x_ref, o_ref, t1_ref, s_ref, t2_ref):
    # x_ref : (1, 1, Th, W)          one row-tile of one (batch, channel) image
    # o_ref : (1, 64, Th//8, Wo)     the 64 output channels for that row-tile
    # t1_ref: (W, Th)   scratch      transposed tile
    # s_ref : (W, Th)   scratch      lane-phase-deinterleaved, still transposed
    # t2_ref: (Th, W)   scratch      lane-phase-deinterleaved, original orientation
    img = x_ref[0, 0]                     # (Th, W)
    Th, W = img.shape
    Ho_t, Wo = Th // 8, W // 8

    # 1) Put W on the sublane axis (single big XLU transpose; both dims multiples of 8).
    t1_ref[...] = jnp.transpose(img)      # t1[w, h] = img[h, w]

    # 2) Deinterleave the W-phase jc with stride-8 *sublane* reads and pack each phase
    #    into a contiguous row group:  s[jc*Wo + w2, h] = img[h, 8*w2 + jc]
    for jc in range(8):
        s_ref[jc * Wo:(jc + 1) * Wo, :] = t1_ref[pl.ds(jc, Wo, stride=8), :]

    # 3) Transpose back:  t2[h, jc*Wo + w2] = img[h, 8*w2 + jc]
    t2_ref[...] = jnp.transpose(s_ref[...])

    # 4) H-phase ic via stride-8 sublane reads; each (ic, jc) tile is now a contiguous
    #    static lane slice of the full-width row block -> plain dense stores.
    for ic in range(8):
        i1, i2 = ic % 4, ic // 4
        rows = t2_ref[pl.ds(ic, Ho_t, stride=8), :]      # (Ho_t, W)
        for jc in range(8):
            j1, j2 = jc % 4, jc // 4
            k = i1 * 16 + j1 * 4 + i2 * 2 + j2           # channel offset within this c-block
            o_ref[0, k, :, :] = rows[:, jc * Wo:(jc + 1) * Wo]


def _pick_tile_h(H, W, itemsize):
    # Largest H tile that keeps a single (Th, W) buffer around <= 1 MiB, shrinking only
    # while the result stays a multiple of 64 so all block shapes remain (8,128)-friendly.
    th = H
    while th % 128 == 0 and th * W * itemsize > (1 << 20):
        th //= 2
    return th


def pixel_unshuffle_4_then_2(x, *, tile_h=None):
    """x: (B, C, H, W), H % 8 == 0, W % 8 == 0  ->  (B, C*64, H//8, W//8)."""
    B, C, H, W = x.shape
    assert H % 8 == 0 and W % 8 == 0, "H and W must be divisible by 8 (factor 4 then 2)"
    Ho, Wo = H // 8, W // 8
    itemsize = jnp.dtype(x.dtype).itemsize
    th = _pick_tile_h(H, W, itemsize) if tile_h is None else tile_h
    assert H % th == 0 and th % 8 == 0
    nh = H // th

    return pl.pallas_call(
        _double_unshuffle_kernel,
        out_shape=jax.ShapeDtypeStruct((B, C * 64, Ho, Wo), x.dtype),
        grid=(B, C, nh),
        in_specs=[pl.BlockSpec((1, 1, th, W), lambda b, c, h: (b, c, h, 0))],
        out_specs=pl.BlockSpec((1, 64, th // 8, Wo), lambda b, c, h: (b, c, h, 0)),
        scratch_shapes=[
            pltpu.VMEM((W, th), x.dtype),   # t1: transposed tile
            pltpu.VMEM((W, th), x.dtype),   # s : lane-phase packed (transposed)
            pltpu.VMEM((th, W), x.dtype),   # t2: lane-phase packed (original orientation)
        ],
        compiler_params=pltpu.CompilerParams(
            # Every grid step writes a disjoint output block -> fully parallel
            # (lets v7x shard the grid across both TensorCores).
            dimension_semantics=("parallel", "parallel", "parallel"),
            # Explicit scoped-VMEM limit with headroom; tile picker keeps actual
            # usage (~7 buffers of <=1 MiB + double buffering) far below this,
            # and 48 MiB is safe on v5e/v6e (128 MiB) and v7x (64 MiB physical).
            vmem_limit_bytes=48 * 1024 * 1024,
        ),
    )(x)


def _pixel_unshuffle_ref(x, r):
    # Plain-JAX reference (matches torch.nn.functional.pixel_unshuffle semantics).
    B, C, H, W = x.shape
    x = x.reshape(B, C, H // r, r, W // r, r)
    x = x.transpose(0, 1, 3, 5, 2, 4)
    return x.reshape(B, C * r * r, H // r, W // r)


if __name__ == "__main__":
    key = jax.random.PRNGKey(0)
    x = jax.random.normal(key, (2, 4, 16, 16), dtype=jnp.float32)

    out = jax.block_until_ready(pixel_unshuffle_4_then_2(x))

    ref = _pixel_unshuffle_ref(_pixel_unshuffle_ref(x, 4), 2)
    assert out.shape == ref.shape == (2, 256, 2, 2), (out.shape, ref.shape)
    np.testing.assert_allclose(np.asarray(out), np.asarray(ref), rtol=0, atol=0)

    print("KERNEL_OK")
</pallas_src>

<mosaic_0001>
module attributes {stable_mosaic.version = 11 : i64} {
  func.func @_double_unshuffle_kernel(%arg0: i32, %arg1: i32, %arg2: i32, %arg3: memref<1x1x16x16xf32, #tpu.memory_space<vmem>>, %arg4: memref<1x64x2x2xf32, #tpu.memory_space<vmem>>, %arg5: memref<16x16xf32, #tpu.memory_space<vmem>>, %arg6: memref<16x16xf32, #tpu.memory_space<vmem>>, %arg7: memref<16x16xf32, #tpu.memory_space<vmem>>) attributes {dimension_semantics = [#tpu.dimension_semantics<parallel>, #tpu.dimension_semantics<parallel>, #tpu.dimension_semantics<parallel>], iteration_bounds = array<i64: 2, 4, 1>, scalar_prefetch = 0 : i64, scratch_operands = 3 : i64, tpu.core_type = #tpu.core_type<tc>, window_params = [{transform_indices = @transform_0, window_bounds = array<i64: 1, 1, 16, 16>}, {transform_indices = @transform_1, window_bounds = array<i64: 1, 64, 2, 2>}]} {
    %c0 = arith.constant 0 : index
    %c0_0 = arith.constant 0 : index
    %c0_1 = arith.constant 0 : index
    %c0_2 = arith.constant 0 : index
    %0 = vector.load %arg3[%c0, %c0_0, %c0_1, %c0_2] : memref<1x1x16x16xf32, #tpu.memory_space<vmem>>, vector<1x1x16x16xf32>
    %1 = vector.shape_cast %0 : vector<1x1x16x16xf32> to vector<16x16xf32>
    %2 = tpu.transpose %1, [1, 0] : vector<16x16xf32> -> vector<16x16xf32>
    %c0_3 = arith.constant 0 : index
    %c0_4 = arith.constant 0 : index
    %3 = vector.load %arg5[%c0_3, %c0_4] : memref<16x16xf32, #tpu.memory_space<vmem>>, vector<16x16xf32>
    tpu.vector_store %arg5[%c0_3, %c0_4], %2 {strides = array<i32>} : memref<16x16xf32, #tpu.memory_space<vmem>>, vector<16x16xf32>,
    %c0_5 = arith.constant 0 : index
    %c0_6 = arith.constant 0 : index
    %4 = tpu.strided_load %arg5[%c0_5, %c0_6] {strides = array<i32: 8, 1>} : memref<16x16xf32, #tpu.memory_space<vmem>>, vector<2x16xf32>
    %c0_7 = arith.constant 0 : index
    %c0_8 = arith.constant 0 : index
    %5 = vector.load %arg6[%c0_7, %c0_8] : memref<16x16xf32, #tpu.memory_space<vmem>>, vector<2x16xf32>
    tpu.vector_store %arg6[%c0_7, %c0_8], %4 {strides = array<i32>} : memref<16x16xf32, #tpu.memory_space<vmem>>, vector<2x16xf32>,
    %c1 = arith.constant 1 : index
    %c0_9 = arith.constant 0 : index
    %6 = tpu.strided_load %arg5[%c1, %c0_9] {strides = array<i32: 8, 1>} : memref<16x16xf32, #tpu.memory_space<vmem>>, vector<2x16xf32>
    %c2 = arith.constant 2 : index
    %c0_10 = arith.constant 0 : index
    %7 = vector.load %arg6[%c2, %c0_10] : memref<16x16xf32, #tpu.memory_space<vmem>>, vector<2x16xf32>
    tpu.vector_store %arg6[%c2, %c0_10], %6 {strides = array<i32>} : memref<16x16xf32, #tpu.memory_space<vmem>>, vector<2x16xf32>,
    %c2_11 = arith.constant 2 : index
    %c0_12 = arith.constant 0 : index
    %8 = tpu.strided_load %arg5[%c2_11, %c0_12] {strides = array<i32: 8, 1>} : memref<16x16xf32, #tpu.memory_space<vmem>>, vector<2x16xf32>
    %c4 = arith.constant 4 : index
    %c0_13 = arith.constant 0 : index
    %9 = vector.load %arg6[%c4, %c0_13] : memref<16x16xf32, #tpu.memory_space<vmem>>, vector<2x16xf32>
    tpu.vector_store %arg6[%c4, %c0_13], %8 {strides = array<i32>} : memref<16x16xf32, #tpu.memory_space<vmem>>, vector<2x16xf32>,
    %c3 = arith.constant 3 : index
    %c0_14 = arith.constant 0 : index
    %10 = tpu.strided_load %arg5[%c3, %c0_14] {strides = array<i32: 8, 1>} : memref<16x16xf32, #tpu.memory_space<vmem>>, vector<2x16xf32>
    %c6 = arith.constant 6 : index
    %c0_15 = arith.constant 0 : index
    %11 = vector.load %arg6[%c6, %c0_15] : memref<16x16xf32, #tpu.memory_space<vmem>>, vector<2x16xf32>
    tpu.vector_store %arg6[%c6, %c0_15], %10 {strides = array<i32>} : memref<16x16xf32, #tpu.memory_space<vmem>>, vector<2x16xf32>,
    %c4_16 = arith.constant 4 : index
    %c0_17 = arith.constant 0 : index
    %12 = tpu.strided_load %arg5[%c4_16, %c0_17] {strides = array<i32: 8, 1>} : memref<16x16xf32, #tpu.memory_space<vmem>>, vector<2x16xf32>
    %c8 = arith.constant 8 : index
    %c0_18 = arith.constant 0 : index
    %13 = vector.load %arg6[%c8, %c0_18] : memref<16x16xf32, #tpu.memory_space<vmem>>, vector<2x16xf32>
    tpu.vector_store %arg6[%c8, %c0_18], %12 {strides = array<i32>} : memref<16x16xf32, #tpu.memory_space<vmem>>, vector<2x16xf32>,
    %c5 = arith.constant 5 : index
    %c0_19 = arith.constant 0 : index
    %14 = tpu.strided_load %arg5[%c5, %c0_19] {strides = array<i32: 8, 1>} : memref<16x16xf32, #tpu.memory_space<vmem>>, vector<2x16xf32>
    %c10 = arith.constant 10 : index
    %c0_20 = arith.constant 0 : index
    %15 = vector.load %arg6[%c10, %c0_20] : memref<16x16xf32, #tpu.memory_space<vmem>>, vector<2x16xf32>
    tpu.vector_store %arg6[%c10, %c0_20], %14 {strides = array<i32>} : memref<16x16xf32, #tpu.memory_space<vmem>>, vector<2x16xf32>,
    %c6_21 = arith.constant 6 : index
    %c0_22 = arith.constant 0 : index
    %16 = tpu.strided_load %arg5[%c6_21, %c0_22] {strides = array<i32: 8, 1>} : memref<16x16xf32, #tpu.memory_space<vmem>>, vector<2x16xf32>
    %c12 = arith.constant 12 : index
    %c0_23 = arith.constant 0 : index
    %17 = vector.load %arg6[%c12, %c0_23] : memref<16x16xf32, #tpu.memory_space<vmem>>, vector<2x16xf32>
    tpu.vector_store %arg6[%c12, %c0_23], %16 {strides = array<i32>} : memref<16x16xf32, #tpu.memory_space<vmem>>, vector<2x16xf32>,
    %c7 = arith.constant 7 : index
    %c0_24 = arith.constant 0 : index
    %18 = tpu.strided_load %arg5[%c7, %c0_24] {strides = array<i32: 8, 1>} : memref<16x16xf32, #tpu.memory_space<vmem>>, vector<2x16xf32>
    %c14 = arith.constant 14 : index
    %c0_25 = arith.constant 0 : index
    %19 = vector.load %arg6[%c14, %c0_25] : memref<16x16xf32, #tpu.memory_space<vmem>>, vector<2x16xf32>
    tpu.vector_store %arg6[%c14, %c0_25], %18 {strides = array<i32>} : memref<16x16xf32, #tpu.memory_space<vmem>>, vector<2x16xf32>,
    %c0_26 = arith.constant 0 : index
    %c0_27 = arith.constant 0 : index
    %20 = vector.load %arg6[%c0_26, %c0_27] : memref<16x16xf32, #tpu.memory_space<vmem>>, vector<16x16xf32>
    %21 = tpu.transpose %20, [1, 0] : vector<16x16xf32> -> vector<16x16xf32>
    %c0_28 = arith.constant 0 : index
    %c0_29 = arith.constant 0 : index
    %22 = vector.load %arg7[%c0_28, %c0_29] : memref<16x16xf32, #tpu.memory_space<vmem>>, vector<16x16xf32>
    tpu.vector_store %arg7[%c0_28, %c0_29], %21 {strides = array<i32>} : memref<16x16xf32, #tpu.memory_space<vmem>>, vector<16x16xf32>,
    %c0_30 = arith.constant 0 : index
    %c0_31 = arith.constant 0 : index
    %23 = tpu.strided_load %arg7[%c0_30, %c0_31] {strides = array<i32: 8, 1>} : memref<16x16xf32, #tpu.memory_space<vmem>>, vector<2x16xf32>
    %24 = vector.extract_strided_slice %23 {offsets = [0, 0], sizes = [2, 2], strides = [1, 1]} : vector<2x16xf32> to vector<2x2xf32>
    %c0_32 = arith.constant 0 : index
    %c0_33 = arith.constant 0 : index
    %c0_34 = arith.constant 0 : index
    %c0_35 = arith.constant 0 : index
    %25 = vector.load %arg4[%c0_32, %c0_33, %c0_34, %c0_35] : memref<1x64x2x2xf32, #tpu.memory_space<vmem>>, vector<1x1x2x2xf32>
    %26 = vector.shape_cast %25 : vector<1x1x2x2xf32> to vector<2x2xf32>
    %27 = vector.shape_cast %24 : vector<2x2xf32> to vector<1x1x2x2xf32>
    tpu.vector_store %arg4[%c0_32, %c0_33, %c0_34, %c0_35], %27 {strides = array<i32>} : memref<1x64x2x2xf32, #tpu.memory_space<vmem>>, vector<1x1x2x2xf32>,
    %28 = vector.extract_strided_slice %23 {offsets = [0, 2], sizes = [2, 2], strides = [1, 1]} : vector<2x16xf32> to vector<2x2xf32>
    %c0_36 = arith.constant 0 : index
    %c4_37 = arith.constant 4 : index
    %c0_38 = arith.constant 0 : index
    %c0_39 = arith.constant 0 : index
    %29 = vector.load %arg4[%c0_36, %c4_37, %c0_38, %c0_39] : memref<1x64x2x2xf32, #tpu.memory_space<vmem>>, vector<1x1x2x2xf32>
    %30 = vector.shape_cast %29 : vector<1x1x2x2xf32> to vector<2x2xf32>
    %31 = vector.shape_cast %28 : vector<2x2xf32> to vector<1x1x2x2xf32>
    tpu.vector_store %arg4[%c0_36, %c4_37, %c0_38, %c0_39], %31 {strides = array<i32>} : memref<1x64x2x2xf32, #tpu.memory_space<vmem>>, vector<1x1x2x2xf32>,
    %32 = vector.extract_strided_slice %23 {offsets = [0, 4], sizes = [2, 2], strides = [1, 1]} : vector<2x16xf32> to vector<2x2xf32>
    %c0_40 = arith.constant 0 : index
    %c8_41 = arith.constant 8 : index
    %c0_42 = arith.constant 0 : index
    %c0_43 = arith.constant 0 : index
    %33 = vector.load %arg4[%c0_40, %c8_41, %c0_42, %c0_43] : memref<1x64x2x2xf32, #tpu.memory_space<vmem>>, vector<1x1x2x2xf32>
    %34 = vector.shape_cast %33 : vector<1x1x2x2xf32> to vector<2x2xf32>
    %35 = vector.shape_cast %32 : vector<2x2xf32> to vector<1x1x2x2xf32>
    tpu.vector_store %arg4[%c0_40, %c8_41, %c0_42, %c0_43], %35 {strides = array<i32>} : memref<1x64x2x2xf32, #tpu.memory_space<vmem>>, vector<1x1x2x2xf32>,
    %36 = vector.extract_strided_slice %23 {offsets = [0, 6], sizes = [2, 2], strides = [1, 1]} : vector<2x16xf32> to vector<2x2xf32>
    %c0_44 = arith.constant 0 : index
    %c12_45 = arith.constant 12 : index
    %c0_46 = arith.constant 0 : index
    %c0_47 = arith.constant 0 : index
    %37 = vector.load %arg4[%c0_44, %c12_45, %c0_46, %c0_47] : memref<1x64x2x2xf32, #tpu.memory_space<vmem>>, vector<1x1x2x2xf32>
    %38 = vector.shape_cast %37 : vector<1x1x2x2xf32> to vector<2x2xf32>
    %39 = vector.shape_cast %36 : vector<2x2xf32> to vector<1x1x2x2xf32>
    tpu.vector_store %arg4[%c0_44, %c12_45, %c0_46, %c0_47], %39 {strides = array<i32>} : memref<1x64x2x2xf32, #tpu.memory_space<vmem>>, vector<1x1x2x2xf32>,
    %40 = vector.extract_strided_slice %23 {offsets = [0, 8], sizes = [2, 2], strides = [1, 1]} : vector<2x16xf32> to vector<2x2xf32>
    %c0_48 = arith.constant 0 : index
    %c1_49 = arith.constant 1 : index
    %c0_50 = arith.constant 0 : index
    %c0_51 = arith.constant 0 : index
    %41 = vector.load %arg4[%c0_48, %c1_49, %c0_50, %c0_51] : memref<1x64x2x2xf32, #tpu.memory_space<vmem>>, vector<1x1x2x2xf32>
    %42 = vector.shape_cast %41 : vector<1x1x2x2xf32> to vector<2x2xf32>
    %43 = vector.shape_cast %40 : vector<2x2xf32> to vector<1x1x2x2xf32>
    tpu.vector_store %arg4[%c0_48, %c1_49, %c0_50, %c0_51], %43 {strides = array<i32>} : memref<1x64x2x2xf32, #tpu.memory_space<vmem>>, vector<1x1x2x2xf32>,
    %44 = vector.extract_strided_slice %23 {offsets = [0, 10], sizes = [2, 2], strides = [1, 1]} : vector<2x16xf32> to vector<2x2xf32>
    %c0_52 = arith.constant 0 : index
    %c5_53 = arith.constant 5 : index
    %c0_54 = arith.constant 0 : index
    %c0_55 = arith.constant 0 : index
    %45 = vector.load %arg4[%c0_52, %c5_53, %c0_54, %c0_55] : memref<1x64x2x2xf32, #tpu.memory_space<vmem>>, vector<1x1x2x2xf32>
    %46 = vector.shape_cast %45 : vector<1x1x2x2xf32> to vector<2x2xf32>
    %47 = vector.shape_cast %44 : vector<2x2xf32> to vector<1x1x2x2xf32>
    tpu.vector_store %arg4[%c0_52, %c5_53, %c0_54, %c0_55], %47 {strides = array<i32>} : memref<1x64x2x2xf32, #tpu.memory_space<vmem>>, vector<1x1x2x2xf32>,
    %48 = vector.extract_strided_slice %23 {offsets = [0, 12], sizes = [2, 2], strides = [1, 1]} : vector<2x16xf32> to vector<2x2xf32>
    %c0_56 = arith.constant 0 : index
    %c9 = arith.constant 9 : index
    %c0_57 = arith.constant 0 : index
    %c0_58 = arith.constant 0 : index
    %49 = vector.load %arg4[%c0_56, %c9, %c0_57, %c0_58] : memref<1x64x2x2xf32, #tpu.memory_space<vmem>>, vector<1x1x2x2xf32>
    %50 = vector.shape_cast %49 : vector<1x1x2x2xf32> to vector<2x2xf32>
    %51 = vector.shape_cast %48 : vector<2x2xf32> to vector<1x1x2x2xf32>
    tpu.vector_store %arg4[%c0_56, %c9, %c0_57, %c0_58], %51 {strides = array<i32>} : memref<1x64x2x2xf32, #tpu.memory_space<vmem>>, vector<1x1x2x2xf32>,
    %52 = vector.extract_strided_slice %23 {offsets = [0, 14], sizes = [2, 2], strides = [1, 1]} : vector<2x16xf32> to vector<2x2xf32>
    %c0_59 = arith.constant 0 : index
    %c13 = arith.constant 13 : index
    %c0_60 = arith.constant 0 : index
    %c0_61 = arith.constant 0 : index
    %53 = vector.load %arg4[%c0_59, %c13, %c0_60, %c0_61] : memref<1x64x2x2xf32, #tpu.memory_space<vmem>>, vector<1x1x2x2xf32>
    %54 = vector.shape_cast %53 : vector<1x1x2x2xf32> to vector<2x2xf32>
    %55 = vector.shape_cast %52 : vector<2x2xf32> to vector<1x1x2x2xf32>
    tpu.vector_store %arg4[%c0_59, %c13, %c0_60, %c0_61], %55 {strides = array<i32>} : memref<1x64x2x2xf32, #tpu.memory_space<vmem>>, vector<1x1x2x2xf32>,
    %c1_62 = arith.constant 1 : index
    %c0_63 = arith.constant 0 : index
    %56 = tpu.strided_load %arg7[%c1_62, %c0_63] {strides = array<i32: 8, 1>} : memref<16x16xf32, #tpu.memory_space<vmem>>, vector<2x16xf32>
    %57 = vector.extract_strided_slice %56 {offsets = [0, 0], sizes = [2, 2], strides = [1, 1]} : vector<2x16xf32> to vector<2x2xf32>
    %c0_64 = arith.constant 0 : index
    %c16 = arith.constant 16 : index
    %c0_65 = arith.constant 0 : index
    %c0_66 = arith.constant 0 : index
    %58 = vector.load %arg4[%c0_64, %c16, %c0_65, %c0_66] : memref<1x64x2x2xf32, #tpu.memory_space<vmem>>, vector<1x1x2x2xf32>
    %59 = vector.shape_cast %58 : vector<1x1x2x2xf32> to vector<2x2xf32>
    %60 = vector.shape_cast %57 : vector<2x2xf32> to vector<1x1x2x2xf32>
    tpu.vector_store %arg4[%c0_64, %c16, %c0_65, %c0_66], %60 {strides = array<i32>} : memref<1x64x2x2xf32, #tpu.memory_space<vmem>>, vector<1x1x2x2xf32>,
    %61 = vector.extract_strided_slice %56 {offsets = [0, 2], sizes = [2, 2], strides = [1, 1]} : vector<2x16xf32> to vector<2x2xf32>
    %c0_67 = arith.constant 0 : index
    %c20 = arith.constant 20 : index
    %c0_68 = arith.constant 0 : index
    %c0_69 = arith.constant 0 : index
    %62 = vector.load %arg4[%c0_67, %c20, %c0_68, %c0_69] : memref<1x64x2x2xf32, #tpu.memory_space<vmem>>, vector<1x1x2x2xf32>
    %63 = vector.shape_cast %62 : vector<1x1x2x2xf32> to vector<2x2xf32>
    %64 = vector.shape_cast %61 : vector<2x2xf32> to vector<1x1x2x2xf32>
    tpu.vector_store %arg4[%c0_67, %c20, %c0_68, %c0_69], %64 {strides = array<i32>} : memref<1x64x2x2xf32, #tpu.memory_space<vmem>>, vector<1x1x2x2xf32>,
    %65 = vector.extract_strided_slice %56 {offsets = [0, 4], sizes = [2, 2], strides = [1, 1]} : vector<2x16xf32> to vector<2x2xf32>
    %c0_70 = arith.constant 0 : index
    %c24 = arith.constant 24 : index
    %c0_71 = arith.constant 0 : index
    %c0_72 = arith.constant 0 : index
    %66 = vector.load %arg4[%c0_70, %c24, %c0_71, %c0_72] : memref<1x64x2x2xf32, #tpu.memory_space<vmem>>, vector<1x1x2x2xf32>
    %67 = vector.shape_cast %66 : vector<1x1x2x2xf32> to vector<2x2xf32>
    %68 = vector.shape_cast %65 : vector<2x2xf32> to vector<1x1x2x2xf32>
    tpu.vector_store %arg4[%c0_70, %c24, %c0_71, %c0_72], %68 {strides = array<i32>} : memref<1x64x2x2xf32, #tpu.memory_space<vmem>>, vector<1x1x2x2xf32>,
    %69 = vector.extract_strided_slice %56 {offsets = [0, 6], sizes = [2, 2], strides = [1, 1]} : vector<2x16xf32> to vector<2x2xf32>
    %c0_73 = arith.constant 0 : index
    %c28 = arith.constant 28 : index
    %c0_74 = arith.constant 0 : index
    %c0_75 = arith.constant 0 : index
    %70 = vector.load %arg4[%c0_73, %c28, %c0_74, %c0_75] : memref<1x64x2x2xf32, #tpu.memory_space<vmem>>, vector<1x1x2x2xf32>
    %71 = vector.shape_cast %70 : vector<1x1x2x2xf32> to vector<2x2xf32>
    %72 = vector.shape_cast %69 : vector<2x2xf32> to vector<1x1x2x2xf32>
    tpu.vector_store %arg4[%c0_73, %c28, %c0_74, %c0_75], %72 {strides = array<i32>} : memref<1x64x2x2xf32, #tpu.memory_space<vmem>>, vector<1x1x2x2xf32>,
    %73 = vector.extract_strided_slice %56 {offsets = [0, 8], sizes = [2, 2], strides = [1, 1]} : vector<2x16xf32> to vector<2x2xf32>
    %c0_76 = arith.constant 0 : index
    %c17 = arith.constant 17 : index
    %c0_77 = arith.constant 0 : index
    %c0_78 = arith.constant 0 : index
    %74 = vector.load %arg4[%c0_76, %c17, %c0_77, %c0_78] : memref<1x64x2x2xf32, #tpu.memory_space<vmem>>, vector<1x1x2x2xf32>
    %75 = vector.shape_cast %74 : vector<1x1x2x2xf32> to vector<2x2xf32>
    %76 = vector.shape_cast %73 : vector<2x2xf32> to vector<1x1x2x2xf32>
    tpu.vector_store %arg4[%c0_76, %c17, %c0_77, %c0_78], %76 {strides = array<i32>} : memref<1x64x2x2xf32, #tpu.memory_space<vmem>>, vector<1x1x2x2xf32>,
    %77 = vector.extract_strided_slice %56 {offsets = [0, 10], sizes = [2, 2], strides = [1, 1]} : vector<2x16xf32> to vector<2x2xf32>
    %c0_79 = arith.constant 0 : index
    %c21 = arith.constant 21 : index
    %c0_80 = arith.constant 0 : index
    %c0_81 = arith.constant 0 : index
    %78 = vector.load %arg4[%c0_79, %c21, %c0_80, %c0_81] : memref<1x64x2x2xf32, #tpu.memory_space<vmem>>, vector<1x1x2x2xf32>
    %79 = vector.shape_cast %78 : vector<1x1x2x2xf32> to vector<2x2xf32>
    %80 = vector.shape_cast %77 : vector<2x2xf32> to vector<1x1x2x2xf32>
    tpu.vector_store %arg4[%c0_79, %c21, %c0_80, %c0_81], %80 {strides = array<i32>} : memref<1x64x2x2xf32, #tpu.memory_space<vmem>>, vector<1x1x2x2xf32>,
    %81 = vector.extract_strided_slice %56 {offsets = [0, 12], sizes = [2, 2], strides = [1, 1]} : vector<2x16xf32> to vector<2x2xf32>
    %c0_82 = arith.constant 0 : index
    %c25 = arith.constant 25 : index
    %c0_83 = arith.constant 0 : index
    %c0_84 = arith.constant 0 : index
    %82 = vector.load %arg4[%c0_82, %c25, %c0_83, %c0_84] : memref<1x64x2x2xf32, #tpu.memory_space<vmem>>, vector<1x1x2x2xf32>
    %83 = vector.shape_cast %82 : vector<1x1x2x2xf32> to vector<2x2xf32>
    %84 = vector.shape_cast %81 : vector<2x2xf32> to vector<1x1x2x2xf32>
    tpu.vector_store %arg4[%c0_82, %c25, %c0_83, %c0_84], %84 {strides = array<i32>} : memref<1x64x2x2xf32, #tpu.memory_space<vmem>>, vector<1x1x2x2xf32>,
    %85 = vector.extract_strided_slice %56 {offsets = [0, 14], sizes = [2, 2], strides = [1, 1]} : vector<2x16xf32> to vector<2x2xf32>
    %c0_85 = arith.constant 0 : index
    %c29 = arith.constant 29 : index
    %c0_86 = arith.constant 0 : index
    %c0_87 = arith.constant 0 : index
    %86 = vector.load %arg4[%c0_85, %c29, %c0_86, %c0_87] : memref<1x64x2x2xf32, #tpu.memory_space<vmem>>, vector<1x1x2x2xf32>
    %87 = vector.shape_cast %86 : vector<1x1x2x2xf32> to vector<2x2xf32>
    %88 = vector.shape_cast %85 : vector<2x2xf32> to vector<1x1x2x2xf32>
    tpu.vector_store %arg4[%c0_85, %c29, %c0_86, %c0_87], %88 {strides = array<i32>} : memref<1x64x2x2xf32, #tpu.memory_space<vmem>>, vector<1x1x2x2xf32>,
    %c2_88 = arith.constant 2 : index
    %c0_89 = arith.constant 0 : index
    %89 = tpu.strided_load %arg7[%c2_88, %c0_89] {strides = array<i32: 8, 1>} : memref<16x16xf32, #tpu.memory_space<vmem>>, vector<2x16xf32>
    %90 = vector.extract_strided_slice %89 {offsets = [0, 0], sizes = [2, 2], strides = [1, 1]} : vector<2x16xf32> to vector<2x2xf32>
    %c0_90 = arith.constant 0 : index
    %c32 = arith.constant 32 : index
    %c0_91 = arith.constant 0 : index
    %c0_92 = arith.constant 0 : index
    %91 = vector.load %arg4[%c0_90, %c32, %c0_91, %c0_92] : memref<1x64x2x2xf32, #tpu.memory_space<vmem>>, vector<1x1x2x2xf32>
    %92 = vector.shape_cast %91 : vector<1x1x2x2xf32> to vector<2x2xf32>
    %93 = vector.shape_cast %90 : vector<2x2xf32> to vector<1x1x2x2xf32>
    tpu.vector_store %arg4[%c0_90, %c32, %c0_91, %c0_92], %93 {strides = array<i32>} : memref<1x64x2x2xf32, #tpu.memory_space<vmem>>, vector<1x1x2x2xf32>,
    %94 = vector.extract_strided_slice %89 {offsets = [0, 2], sizes = [2, 2], strides = [1, 1]} : vector<2x16xf32> to vector<2x2xf32>
    %c0_93 = arith.constant 0 : index
    %c36 = arith.constant 36 : index
    %c0_94 = arith.constant 0 : index
    %c0_95 = arith.constant 0 : index
    %95 = vector.load %arg4[%c0_93, %c36, %c0_94, %c0_95] : memref<1x64x2x2xf32, #tpu.memory_space<vmem>>, vector<1x1x2x2xf32>
    %96 = vector.shape_cast %95 : vector<1x1x2x2xf32> to vector<2x2xf32>
    %97 = vector.shape_cast %94 : vector<2x2xf32> to vector<1x1x2x2xf32>
    tpu.vector_store %arg4[%c0_93, %c36, %c0_94, %c0_95], %97 {strides = array<i32>} : memref<1x64x2x2xf32, #tpu.memory_space<vmem>>, vector<1x1x2x2xf32>,
    %98 = vector.extract_strided_slice %89 {offsets = [0, 4], sizes = [2, 2], strides = [1, 1]} : vector<2x16xf32> to vector<2x2xf32>
    %c0_96 = arith.constant 0 : index
    %c40 = arith.constant 40 : index
    %c0_97 = arith.constant 0 : index
    %c0_98 = arith.constant 0 : index
    %99 = vector.load %arg4[%c0_96, %c40, %c0_97, %c0_98] : memref<1x64x2x2xf32, #tpu.memory_space<vmem>>, vector<1x1x2x2xf32>
    %100 = vector.shape_cast %99 : vector<1x1x2x2xf32> to vector<2x2xf32>
    %101 = vector.shape_cast %98 : vector<2x2xf32> to vector<1x1x2x2xf32>
    tpu.vector_store %arg4[%c0_96, %c40, %c0_97, %c0_98], %101 {strides = array<i32>} : memref<1x64x2x2xf32, #tpu.memory_space<vmem>>, vector<1x1x2x2xf32>,
    %102 = vector.extract_strided_slice %89 {offsets = [0, 6], sizes = [2, 2], strides = [1, 1]} : vector<2x16xf32> to vector<2x2xf32>
    %c0_99 = arith.constant 0 : index
    %c44 = arith.constant 44 : index
    %c0_100 = arith.constant 0 : index
    %c0_101 = arith.constant 0 : index
    %103 = vector.load %arg4[%c0_99, %c44, %c0_100, %c0_101] : memref<1x64x2x2xf32, #tpu.memory_space<vmem>>, vector<1x1x2x2xf32>
    %104 = vector.shape_cast %103 : vector<1x1x2x2xf32> to vector<2x2xf32>
    %105 = vector.shape_cast %102 : vector<2x2xf32> to vector<1x1x2x2xf32>
    tpu.vector_store %arg4[%c0_99, %c44, %c0_100, %c0_101], %105 {strides = array<i32>} : memref<1x64x2x2xf32, #tpu.memory_space<vmem>>, vector<1x1x2x2xf32>,
    %106 = vector.extract_strided_slice %89 {offsets = [0, 8], sizes = [2, 2], strides = [1, 1]} : vector<2x16xf32> to vector<2x2xf32>
    %c0_102 = arith.constant 0 : index
    %c33 = arith.constant 33 : index
    %c0_103 = arith.constant 0 : index
    %c0_104 = arith.constant 0 : index
    %107 = vector.load %arg4[%c0_102, %c33, %c0_103, %c0_104] : memref<1x64x2x2xf32, #tpu.memory_space<vmem>>, vector<1x1x2x2xf32>
    %108 = vector.shape_cast %107 : vector<1x1x2x2xf32> to vector<2x2xf32>
    %109 = vector.shape_cast %106 : vector<2x2xf32> to vector<1x1x2x2xf32>
    tpu.vector_store %arg4[%c0_102, %c33, %c0_103, %c0_104], %109 {strides = array<i32>} : memref<1x64x2x2xf32, #tpu.memory_space<vmem>>, vector<1x1x2x2xf32>,
    %110 = vector.extract_strided_slice %89 {offsets = [0, 10], sizes = [2, 2], strides = [1, 1]} : vector<2x16xf32> to vector<2x2xf32>
    %c0_105 = arith.constant 0 : index
    %c37 = arith.constant 37 : index
    %c0_106 = arith.constant 0 : index
    %c0_107 = arith.constant 0 : index
    %111 = vector.load %arg4[%c0_105, %c37, %c0_106, %c0_107] : memref<1x64x2x2xf32, #tpu.memory_space<vmem>>, vector<1x1x2x2xf32>
    %112 = vector.shape_cast %111 : vector<1x1x2x2xf32> to vector<2x2xf32>
    %113 = vector.shape_cast %110 : vector<2x2xf32> to vector<1x1x2x2xf32>
    tpu.vector_store %arg4[%c0_105, %c37, %c0_106, %c0_107], %113 {strides = array<i32>} : memref<1x64x2x2xf32, #tpu.memory_space<vmem>>, vector<1x1x2x2xf32>,
    %114 = vector.extract_strided_slice %89 {offsets = [0, 12], sizes = [2, 2], strides = [1, 1]} : vector<2x16xf32> to vector<2x2xf32>
    %c0_108 = arith.constant 0 : index
    %c41 = arith.constant 41 : index
    %c0_109 = arith.constant 0 : index
    %c0_110 = arith.constant 0 : index
    %115 = vector.load %arg4[%c0_108, %c41, %c0_109, %c0_110] : memref<1x64x2x2xf32, #tpu.memory_space<vmem>>, vector<1x1x2x2xf32>
    %116 = vector.shape_cast %115 : vector<1x1x2x2xf32> to vector<2x2xf32>
    %117 = vector.shape_cast %114 : vector<2x2xf32> to vector<1x1x2x2xf32>
    tpu.vector_store %arg4[%c0_108, %c41, %c0_109, %c0_110], %117 {strides = array<i32>} : memref<1x64x2x2xf32, #tpu.memory_space<vmem>>, vector<1x1x2x2xf32>,
    %118 = vector.extract_strided_slice %89 {offsets = [0, 14], sizes = [2, 2], strides = [1, 1]} : vector<2x16xf32> to vector<2x2xf32>
    %c0_111 = arith.constant 0 : index
    %c45 = arith.constant 45 : index
    %c0_112 = arith.constant 0 : index
    %c0_113 = arith.constant 0 : index
    %119 = vector.load %arg4[%c0_111, %c45, %c0_112, %c0_113] : memref<1x64x2x2xf32, #tpu.memory_space<vmem>>, vector<1x1x2x2xf32>
    %120 = vector.shape_cast %119 : vector<1x1x2x2xf32> to vector<2x2xf32>
    %121 = vector.shape_cast %118 : vector<2x2xf32> to vector<1x1x2x2xf32>
    tpu.vector_store %arg4[%c0_111, %c45, %c0_112, %c0_113], %121 {strides = array<i32>} : memref<1x64x2x2xf32, #tpu.memory_space<vmem>>, vector<1x1x2x2xf32>,
    %c3_114 = arith.constant 3 : index
    %c0_115 = arith.constant 0 : index
    %122 = tpu.strided_load %arg7[%c3_114, %c0_115] {strides = array<i32: 8, 1>} : memref<16x16xf32, #tpu.memory_space<vmem>>, vector<2x16xf32>
    %123 = vector.extract_strided_slice %122 {offsets = [0, 0], sizes = [2, 2], strides = [1, 1]} : vector<2x16xf32> to vector<2x2xf32>
    %c0_116 = arith.constant 0 : index
    %c48 = arith.constant 48 : index
    %c0_117 = arith.constant 0 : index
    %c0_118 = arith.constant 0 : index
    %124 = vector.load %arg4[%c0_116, %c48, %c0_117, %c0_118] : memref<1x64x2x2xf32, #tpu.memory_space<vmem>>, vector<1x1x2x2xf32>
    %125 = vector.shape_cast %124 : vector<1x1x2x2xf32> to vector<2x2xf32>
    %126 = vector.shape_cast %123 : vector<2x2xf32> to vector<1x1x2x2xf32>
    tpu.vector_store %arg4[%c0_116, %c48, %c0_117, %c0_118], %126 {strides = array<i32>} : memref<1x64x2x2xf32, #tpu.memory_space<vmem>>, vector<1x1x2x2xf32>,
    %127 = vector.extract_strided_slice %122 {offsets = [0, 2], sizes = [2, 2], strides = [1, 1]} : vector<2x16xf32> to vector<2x2xf32>
    %c0_119 = arith.constant 0 : index
    %c52 = arith.constant 52 : index
    %c0_120 = arith.constant 0 : index
    %c0_121 = arith.constant 0 : index
    %128 = vector.load %arg4[%c0_119, %c52, %c0_120, %c0_121] : memref<1x64x2x2xf32, #tpu.memory_space<vmem>>, vector<1x1x2x2xf32>
    %129 = vector.shape_cast %128 : vector<1x1x2x2xf32> to vector<2x2xf32>
    %130 = vector.shape_cast %127 : vector<2x2xf32> to vector<1x1x2x2xf32>
    tpu.vector_store %arg4[%c0_119, %c52, %c0_120, %c0_121], %130 {strides = array<i32>} : memref<1x64x2x2xf32, #tpu.memory_space<vmem>>, vector<1x1x2x2xf32>,
    %131 = vector.extract_strided_slice %122 {offsets = [0, 4], sizes = [2, 2], strides = [1, 1]} : vector<2x16xf32> to vector<2x2xf32>
    %c0_122 = arith.constant 0 : index
    %c56 = arith.constant 56 : index
    %c0_123 = arith.constant 0 : index
    %c0_124 = arith.constant 0 : index
    %132 = vector.load %arg4[%c0_122, %c56, %c0_123, %c0_124] : memref<1x64x2x2xf32, #tpu.memory_space<vmem>>, vector<1x1x2x2xf32>
    %133 = vector.shape_cast %132 : vector<1x1x2x2xf32> to vector<2x2xf32>
    %134 = vector.shape_cast %131 : vector<2x2xf32> to vector<1x1x2x2xf32>
    tpu.vector_store %arg4[%c0_122, %c56, %c0_123, %c0_124], %134 {strides = array<i32>} : memref<1x64x2x2xf32, #tpu.memory_space<vmem>>, vector<1x1x2x2xf32>,
    %135 = vector.extract_strided_slice %122 {offsets = [0, 6], sizes = [2, 2], strides = [1, 1]} : vector<2x16xf32> to vector<2x2xf32>
    %c0_125 = arith.constant 0 : index
    %c60 = arith.constant 60 : index
    %c0_126 = arith.constant 0 : index
    %c0_127 = arith.constant 0 : index
    %136 = vector.load %arg4[%c0_125, %c60, %c0_126, %c0_127] : memref<1x64x2x2xf32, #tpu.memory_space<vmem>>, vector<1x1x2x2xf32>
    %137 = vector.shape_cast %136 : vector<1x1x2x2xf32> to vector<2x2xf32>
    %138 = vector.shape_cast %135 : vector<2x2xf32> to vector<1x1x2x2xf32>
    tpu.vector_store %arg4[%c0_125, %c60, %c0_126, %c0_127], %138 {strides = array<i32>} : memref<1x64x2x2xf32, #tpu.memory_space<vmem>>, vector<1x1x2x2xf32>,
    %139 = vector.extract_strided_slice %122 {offsets = [0, 8], sizes = [2, 2], strides = [1, 1]} : vector<2x16xf32> to vector<2x2xf32>
    %c0_128 = arith.constant 0 : index
    %c49 = arith.constant 49 : index
    %c0_129 = arith.constant 0 : index
    %c0_130 = arith.constant 0 : index
    %140 = vector.load %arg4[%c0_128, %c49, %c0_129, %c0_130] : memref<1x64x2x2xf32, #tpu.memory_space<vmem>>, vector<1x1x2x2xf32>
    %141 = vector.shape_cast %140 : vector<1x1x2x2xf32> to vector<2x2xf32>
    %142 = vector.shape_cast %139 : vector<2x2xf32> to vector<1x1x2x2xf32>
    tpu.vector_store %arg4[%c0_128, %c49, %c0_129, %c0_130], %142 {strides = array<i32>} : memref<1x64x2x2xf32, #tpu.memory_space<vmem>>, vector<1x1x2x2xf32>,
    %143 = vector.extract_strided_slice %122 {offsets = [0, 10], sizes = [2, 2], strides = [1, 1]} : vector<2x16xf32> to vector<2x2xf32>
    %c0_131 = arith.constant 0 : index
    %c53 = arith.constant 53 : index
    %c0_132 = arith.constant 0 : index
    %c0_133 = arith.constant 0 : index
    %144 = vector.load %arg4[%c0_131, %c53, %c0_132, %c0_133] : memref<1x64x2x2xf32, #tpu.memory_space<vmem>>, vector<1x1x2x2xf32>
    %145 = vector.shape_cast %144 : vector<1x1x2x2xf32> to vector<2x2xf32>
    %146 = vector.shape_cast %143 : vector<2x2xf32> to vector<1x1x2x2xf32>
    tpu.vector_store %arg4[%c0_131, %c53, %c0_132, %c0_133], %146 {strides = array<i32>} : memref<1x64x2x2xf32, #tpu.memory_space<vmem>>, vector<1x1x2x2xf32>,
    %147 = vector.extract_strided_slice %122 {offsets = [0, 12], sizes = [2, 2], strides = [1, 1]} : vector<2x16xf32> to vector<2x2xf32>
    %c0_134 = arith.constant 0 : index
    %c57 = arith.constant 57 : index
    %c0_135 = arith.constant 0 : index
    %c0_136 = arith.constant 0 : index
    %148 = vector.load %arg4[%c0_134, %c57, %c0_135, %c0_136] : memref<1x64x2x2xf32, #tpu.memory_space<vmem>>, vector<1x1x2x2xf32>
    %149 = vector.shape_cast %148 : vector<1x1x2x2xf32> to vector<2x2xf32>
    %150 = vector.shape_cast %147 : vector<2x2xf32> to vector<1x1x2x2xf32>
    tpu.vector_store %arg4[%c0_134, %c57, %c0_135, %c0_136], %150 {strides = array<i32>} : memref<1x64x2x2xf32, #tpu.memory_space<vmem>>, vector<1x1x2x2xf32>,
    %151 = vector.extract_strided_slice %122 {offsets = [0, 14], sizes = [2, 2], strides = [1, 1]} : vector<2x16xf32> to vector<2x2xf32>
    %c0_137 = arith.constant 0 : index
    %c61 = arith.constant 61 : index
    %c0_138 = arith.constant 0 : index
    %c0_139 = arith.constant 0 : index
    %152 = vector.load %arg4[%c0_137, %c61, %c0_138, %c0_139] : memref<1x64x2x2xf32, #tpu.memory_space<vmem>>, vector<1x1x2x2xf32>
    %153 = vector.shape_cast %152 : vector<1x1x2x2xf32> to vector<2x2xf32>
    %154 = vector.shape_cast %151 : vector<2x2xf32> to vector<1x1x2x2xf32>
    tpu.vector_store %arg4[%c0_137, %c61, %c0_138, %c0_139], %154 {strides = array<i32>} : memref<1x64x2x2xf32, #tpu.memory_space<vmem>>, vector<1x1x2x2xf32>,
    %c4_140 = arith.constant 4 : index
    %c0_141 = arith.constant 0 : index
    %155 = tpu.strided_load %arg7[%c4_140, %c0_141] {strides = array<i32: 8, 1>} : memref<16x16xf32, #tpu.memory_space<vmem>>, vector<2x16xf32>
    %156 = vector.extract_strided_slice %155 {offsets = [0, 0], sizes = [2, 2], strides = [1, 1]} : vector<2x16xf32> to vector<2x2xf32>
    %c0_142 = arith.constant 0 : index
    %c2_143 = arith.constant 2 : index
    %c0_144 = arith.constant 0 : index
    %c0_145 = arith.constant 0 : index
    %157 = vector.load %arg4[%c0_142, %c2_143, %c0_144, %c0_145] : memref<1x64x2x2xf32, #tpu.memory_space<vmem>>, vector<1x1x2x2xf32>
    %158 = vector.shape_cast %157 : vector<1x1x2x2xf32> to vector<2x2xf32>
    %159 = vector.shape_cast %156 : vector<2x2xf32> to vector<1x1x2x2xf32>
    tpu.vector_store %arg4[%c0_142, %c2_143, %c0_144, %c0_145], %159 {strides = array<i32>} : memref<1x64x2x2xf32, #tpu.memory_space<vmem>>, vector<1x1x2x2xf32>,
    %160 = vector.extract_strided_slice %155 {offsets = [0, 2], sizes = [2, 2], strides = [1, 1]} : vector<2x16xf32> to vector<2x2xf32>
    %c0_146 = arith.constant 0 : index
    %c6_147 = arith.constant 6 : index
    %c0_148 = arith.constant 0 : index
    %c0_149 = arith.constant 0 : index
    %161 = vector.load %arg4[%c0_146, %c6_147, %c0_148, %c0_149] : memref<1x64x2x2xf32, #tpu.memory_space<vmem>>, vector<1x1x2x2xf32>
    %162 = vector.shape_cast %161 : vector<1x1x2x2xf32> to vector<2x2xf32>
    %163 = vector.shape_cast %160 : vector<2x2xf32> to vector<1x1x2x2xf32>
    tpu.vector_store %arg4[%c0_146, %c6_147, %c0_148, %c0_149], %163 {strides = array<i32>} : memref<1x64x2x2xf32, #tpu.memory_space<vmem>>, vector<1x1x2x2xf32>,
    %164 = vector.extract_strided_slice %155 {offsets = [0, 4], sizes = [2, 2], strides = [1, 1]} : vector<2x16xf32> to vector<2x2xf32>
    %c0_150 = arith.constant 0 : index
    %c10_151 = arith.constant 10 : index
    %c0_152 = arith.constant 0 : index
    %c0_153 = arith.constant 0 : index
    %165 = vector.load %arg4[%c0_150, %c10_151, %c0_152, %c0_153] : memref<1x64x2x2xf32, #tpu.memory_space<vmem>>, vector<1x1x2x2xf32>
    %166 = vector.shape_cast %165 : vector<1x1x2x2xf32> to vector<2x2xf32>
    %167 = vector.shape_cast %164 : vector<2x2xf32> to vector<1x1x2x2xf32>
    tpu.vector_store %arg4[%c0_150, %c10_151, %c0_152, %c0_153], %167 {strides = array<i32>} : memref<1x64x2x2xf32, #tpu.memory_space<vmem>>, vector<1x1x2x2xf32>,
    %168 = vector.extract_strided_slice %155 {offsets = [0, 6], sizes = [2, 2], strides = [1, 1]} : vector<2x16xf32> to vector<2x2xf32>
    %c0_154 = arith.constant 0 : index
    %c14_155 = arith.constant 14 : index
    %c0_156 = arith.constant 0 : index
    %c0_157 = arith.constant 0 : index
    %169 = vector.load %arg4[%c0_154, %c14_155, %c0_156, %c0_157] : memref<1x64x2x2xf32, #tpu.memory_space<vmem>>, vector<1x1x2x2xf32>
    %170 = vector.shape_cast %169 : vector<1x1x2x2xf32> to vector<2x2xf32>
    %171 = vector.shape_cast %168 : vector<2x2xf32> to vector<1x1x2x2xf32>
    tpu.vector_store %arg4[%c0_154, %c14_155, %c0_156, %c0_157], %171 {strides = array<i32>} : memref<1x64x2x2xf32, #tpu.memory_space<vmem>>, vector<1x1x2x2xf32>,
    %172 = vector.extract_strided_slice %155 {offsets = [0, 8], sizes = [2, 2], strides = [1, 1]} : vector<2x16xf32> to vector<2x2xf32>
    %c0_158 = arith.constant 0 : index
    %c3_159 = arith.constant 3 : index
    %c0_160 = arith.constant 0 : index
    %c0_161 = arith.constant 0 : index
    %173 = vector.load %arg4[%c0_158, %c3_159, %c0_160, %c0_161] : memref<1x64x2x2xf32, #tpu.memory_space<vmem>>, vector<1x1x2x2xf32>
    %174 = vector.shape_cast %173 : vector<1x1x2x2xf32> to vector<2x2xf32>
    %175 = vector.shape_cast %172 : vector<2x2xf32> to vector<1x1x2x2xf32>
    tpu.vector_store %arg4[%c0_158, %c3_159, %c0_160, %c0_161], %175 {strides = array<i32>} : memref<1x64x2x2xf32, #tpu.memory_space<vmem>>, vector<1x1x2x2xf32>,
    %176 = vector.extract_strided_slice %155 {offsets = [0, 10], sizes = [2, 2], strides = [1, 1]} : vector<2x16xf32> to vector<2x2xf32>
    %c0_162 = arith.constant 0 : index
    %c7_163 = arith.constant 7 : index
    %c0_164 = arith.constant 0 : index
    %c0_165 = arith.constant 0 : index
    %177 = vector.load %arg4[%c0_162, %c7_163, %c0_164, %c0_165] : memref<1x64x2x2xf32, #tpu.memory_space<vmem>>, vector<1x1x2x2xf32>
    %178 = vector.shape_cast %177 : vector<1x1x2x2xf32> to vector<2x2xf32>
    %179 = vector.shape_cast %176 : vector<2x2xf32> to vector<1x1x2x2xf32>
    tpu.vector_store %arg4[%c0_162, %c7_163, %c0_164, %c0_165], %179 {strides = array<i32>} : memref<1x64x2x2xf32, #tpu.memory_space<vmem>>, vector<1x1x2x2xf32>,
    %180 = vector.extract_strided_slice %155 {offsets = [0, 12], sizes = [2, 2], strides = [1, 1]} : vector<2x16xf32> to vector<2x2xf32>
    %c0_166 = arith.constant 0 : index
    %c11 = arith.constant 11 : index
    %c0_167 = arith.constant 0 : index
    %c0_168 = arith.constant 0 : index
    %181 = vector.load %arg4[%c0_166, %c11, %c0_167, %c0_168] : memref<1x64x2x2xf32, #tpu.memory_space<vmem>>, vector<1x1x2x2xf32>
    %182 = vector.shape_cast %181 : vector<1x1x2x2xf32> to vector<2x2xf32>
    %183 = vector.shape_cast %180 : vector<2x2xf32> to vector<1x1x2x2xf32>
    tpu.vector_store %arg4[%c0_166, %c11, %c0_167, %c0_168], %183 {strides = array<i32>} : memref<1x64x2x2xf32, #tpu.memory_space<vmem>>, vector<1x1x2x2xf32>,
    %184 = vector.extract_strided_slice %155 {offsets = [0, 14], sizes = [2, 2], strides = [1, 1]} : vector<2x16xf32> to vector<2x2xf32>
    %c0_169 = arith.constant 0 : index
    %c15 = arith.constant 15 : index
    %c0_170 = arith.constant 0 : index
    %c0_171 = arith.constant 0 : index
    %185 = vector.load %arg4[%c0_169, %c15, %c0_170, %c0_171] : memref<1x64x2x2xf32, #tpu.memory_space<vmem>>, vector<1x1x2x2xf32>
    %186 = vector.shape_cast %185 : vector<1x1x2x2xf32> to vector<2x2xf32>
    %187 = vector.shape_cast %184 : vector<2x2xf32> to vector<1x1x2x2xf32>
    tpu.vector_store %arg4[%c0_169, %c15, %c0_170, %c0_171], %187 {strides = array<i32>} : memref<1x64x2x2xf32, #tpu.memory_space<vmem>>, vector<1x1x2x2xf32>,
    %c5_172 = arith.constant 5 : index
    %c0_173 = arith.constant 0 : index
    %188 = tpu.strided_load %arg7[%c5_172, %c0_173] {strides = array<i32: 8, 1>} : memref<16x16xf32, #tpu.memory_space<vmem>>, vector<2x16xf32>
    %189 = vector.extract_strided_slice %188 {offsets = [0, 0], sizes = [2, 2], strides = [1, 1]} : vector<2x16xf32> to vector<2x2xf32>
    %c0_174 = arith.constant 0 : index
    %c18 = arith.constant 18 : index
    %c0_175 = arith.constant 0 : index
    %c0_176 = arith.constant 0 : index
    %190 = vector.load %arg4[%c0_174, %c18, %c0_175, %c0_176] : memref<1x64x2x2xf32, #tpu.memory_space<vmem>>, vector<1x1x2x2xf32>
    %191 = vector.shape_cast %190 : vector<1x1x2x2xf32> to vector<2x2xf32>
    %192 = vector.shape_cast %189 : vector<2x2xf32> to vector<1x1x2x2xf32>
    tpu.vector_store %arg4[%c0_174, %c18, %c0_175, %c0_176], %192 {strides = array<i32>} : memref<1x64x2x2xf32, #tpu.memory_space<vmem>>, vector<1x1x2x2xf32>,
    %193 = vector.extract_strided_slice %188 {offsets = [0, 2], sizes = [2, 2], strides = [1, 1]} : vector<2x16xf32> to vector<2x2xf32>
    %c0_177 = arith.constant 0 : index
    %c22 = arith.constant 22 : index
    %c0_178 = arith.constant 0 : index
    %c0_179 = arith.constant 0 : index
    %194 = vector.load %arg4[%c0_177, %c22, %c0_178, %c0_179] : memref<1x64x2x2xf32, #tpu.memory_space<vmem>>, vector<1x1x2x2xf32>
    %195 = vector.shape_cast %194 : vector<1x1x2x2xf32> to vector<2x2xf32>
    %196 = vector.shape_cast %193 : vector<2x2xf32> to vector<1x1x2x2xf32>
    tpu.vector_store %arg4[%c0_177, %c22, %c0_178, %c0_179], %196 {strides = array<i32>} : memref<1x64x2x2xf32, #tpu.memory_space<vmem>>, vector<1x1x2x2xf32>,
    %197 = vector.extract_strided_slice %188 {offsets = [0, 4], sizes = [2, 2], strides = [1, 1]} : vector<2x16xf32> to vector<2x2xf32>
    %c0_180 = arith.constant 0 : index
    %c26 = arith.constant 26 : index
    %c0_181 = arith.constant 0 : index
    %c0_182 = arith.constant 0 : index
    %198 = vector.load %arg4[%c0_180, %c26, %c0_181, %c0_182] : memref<1x64x2x2xf32, #tpu.memory_space<vmem>>, vector<1x1x2x2xf32>
    %199 = vector.shape_cast %198 : vector<1x1x2x2xf32> to vector<2x2xf32>
    %200 = vector.shape_cast %197 : vector<2x2xf32> to vector<1x1x2x2xf32>
    tpu.vector_store %arg4[%c0_180, %c26, %c0_181, %c0_182], %200 {strides = array<i32>} : memref<1x64x2x2xf32, #tpu.memory_space<vmem>>, vector<1x1x2x2xf32>,
    %201 = vector.extract_strided_slice %188 {offsets = [0, 6], sizes = [2, 2], strides = [1, 1]} : vector<2x16xf32> to vector<2x2xf32>
    %c0_183 = arith.constant 0 : index
    %c30 = arith.constant 30 : index
    %c0_184 = arith.constant 0 : index
    %c0_185 = arith.constant 0 : index
    %202 = vector.load %arg4[%c0_183, %c30, %c0_184, %c0_185] : memref<1x64x2x2xf32, #tpu.memory_space<vmem>>, vector<1x1x2x2xf32>
    %203 = vector.shape_cast %202 : vector<1x1x2x2xf32> to vector<2x2xf32>
    %204 = vector.shape_cast %201 : vector<2x2xf32> to vector<1x1x2x2xf32>
    tpu.vector_store %arg4[%c0_183, %c30, %c0_184, %c0_185], %204 {strides = array<i32>} : memref<1x64x2x2xf32, #tpu.memory_space<vmem>>, vector<1x1x2x2xf32>,
    %205 = vector.extract_strided_slice %188 {offsets = [0, 8], sizes = [2, 2], strides = [1, 1]} : vector<2x16xf32> to vector<2x2xf32>
    %c0_186 = arith.constant 0 : index
    %c19 = arith.constant 19 : index
    %c0_187 = arith.constant 0 : index
    %c0_188 = arith.constant 0 : index
    %206 = vector.load %arg4[%c0_186, %c19, %c0_187, %c0_188] : memref<1x64x2x2xf32, #tpu.memory_space<vmem>>, vector<1x1x2x2xf32>
    %207 = vector.shape_cast %206 : vector<1x1x2x2xf32> to vector<2x2xf32>
    %208 = vector.shape_cast %205 : vector<2x2xf32> to vector<1x1x2x2xf32>
    tpu.vector_store %arg4[%c0_186, %c19, %c0_187, %c0_188], %208 {strides = array<i32>} : memref<1x64x2x2xf32, #tpu.memory_space<vmem>>, vector<1x1x2x2xf32>,
    %209 = vector.extract_strided_slice %188 {offsets = [0, 10], sizes = [2, 2], strides = [1, 1]} : vector<2x16xf32> to vector<2x2xf32>
    %c0_189 = arith.constant 0 : index
    %c23 = arith.constant 23 : index
    %c0_190 = arith.constant 0 : index
    %c0_191 = arith.constant 0 : index
    %210 = vector.load %arg4[%c0_189, %c23, %c0_190, %c0_191] : memref<1x64x2x2xf32, #tpu.memory_space<vmem>>, vector<1x1x2x2xf32>
    %211 = vector.shape_cast %210 : vector<1x1x2x2xf32> to vector<2x2xf32>
    %212 = vector.shape_cast %209 : vector<2x2xf32> to vector<1x1x2x2xf32>
    tpu.vector_store %arg4[%c0_189, %c23, %c0_190, %c0_191], %212 {strides = array<i32>} : memref<1x64x2x2xf32, #tpu.memory_space<vmem>>, vector<1x1x2x2xf32>,
    %213 = vector.extract_strided_slice %188 {offsets = [0, 12], sizes = [2, 2], strides = [1, 1]} : vector<2x16xf32> to vector<2x2xf32>
    %c0_192 = arith.constant 0 : index
    %c27 = arith.constant 27 : index
    %c0_193 = arith.constant 0 : index
    %c0_194 = arith.constant 0 : index
    %214 = vector.load %arg4[%c0_192, %c27, %c0_193, %c0_194] : memref<1x64x2x2xf32, #tpu.memory_space<vmem>>, vector<1x1x2x2xf32>
    %215 = vector.shape_cast %214 : vector<1x1x2x2xf32> to vector<2x2xf32>
    %216 = vector.shape_cast %213 : vector<2x2xf32> to vector<1x1x2x2xf32>
    tpu.vector_store %arg4[%c0_192, %c27, %c0_193, %c0_194], %216 {strides = array<i32>} : memref<1x64x2x2xf32, #tpu.memory_space<vmem>>, vector<1x1x2x2xf32>,
    %217 = vector.extract_strided_slice %188 {offsets = [0, 14], sizes = [2, 2], strides = [1, 1]} : vector<2x16xf32> to vector<2x2xf32>
    %c0_195 = arith.constant 0 : index
    %c31 = arith.constant 31 : index
    %c0_196 = arith.constant 0 : index
    %c0_197 = arith.constant 0 : index
    %218 = vector.load %arg4[%c0_195, %c31, %c0_196, %c0_197] : memref<1x64x2x2xf32, #tpu.memory_space<vmem>>, vector<1x1x2x2xf32>
    %219 = vector.shape_cast %218 : vector<1x1x2x2xf32> to vector<2x2xf32>
    %220 = vector.shape_cast %217 : vector<2x2xf32> to vector<1x1x2x2xf32>
    tpu.vector_store %arg4[%c0_195, %c31, %c0_196, %c0_197], %220 {strides = array<i32>} : memref<1x64x2x2xf32, #tpu.memory_space<vmem>>, vector<1x1x2x2xf32>,
    %c6_198 = arith.constant 6 : index
    %c0_199 = arith.constant 0 : index
    %221 = tpu.strided_load %arg7[%c6_198, %c0_199] {strides = array<i32: 8, 1>} : memref<16x16xf32, #tpu.memory_space<vmem>>, vector<2x16xf32>
    %222 = vector.extract_strided_slice %221 {offsets = [0, 0], sizes = [2, 2], strides = [1, 1]} : vector<2x16xf32> to vector<2x2xf32>
    %c0_200 = arith.constant 0 : index
    %c34 = arith.constant 34 : index
    %c0_201 = arith.constant 0 : index
    %c0_202 = arith.constant 0 : index
    %223 = vector.load %arg4[%c0_200, %c34, %c0_201, %c0_202] : memref<1x64x2x2xf32, #tpu.memory_space<vmem>>, vector<1x1x2x2xf32>
    %224 = vector.shape_cast %223 : vector<1x1x2x2xf32> to vector<2x2xf32>
    %225 = vector.shape_cast %222 : vector<2x2xf32> to vector<1x1x2x2xf32>
    tpu.vector_store %arg4[%c0_200, %c34, %c0_201, %c0_202], %225 {strides = array<i32>} : memref<1x64x2x2xf32, #tpu.memory_space<vmem>>, vector<1x1x2x2xf32>,
    %226 = vector.extract_strided_slice %221 {offsets = [0, 2], sizes = [2, 2], strides = [1, 1]} : vector<2x16xf32> to vector<2x2xf32>
    %c0_203 = arith.constant 0 : index
    %c38 = arith.constant 38 : index
    %c0_204 = arith.constant 0 : index
    %c0_205 = arith.constant 0 : index
    %227 = vector.load %arg4[%c0_203, %c38, %c0_204, %c0_205] : memref<1x64x2x2xf32, #tpu.memory_space<vmem>>, vector<1x1x2x2xf32>
    %228 = vector.shape_cast %227 : vector<1x1x2x2xf32> to vector<2x2xf32>
    %229 = vector.shape_cast %226 : vector<2x2xf32> to vector<1x1x2x2xf32>
    tpu.vector_store %arg4[%c0_203, %c38, %c0_204, %c0_205], %229 {strides = array<i32>} : memref<1x64x2x2xf32, #tpu.memory_space<vmem>>, vector<1x1x2x2xf32>,
    %230 = vector.extract_strided_slice %221 {offsets = [0, 4], sizes = [2, 2], strides = [1, 1]} : vector<2x16xf32> to vector<2x2xf32>
    %c0_206 = arith.constant 0 : index
    %c42 = arith.constant 42 : index
    %c0_207 = arith.constant 0 : index
    %c0_208 = arith.constant 0 : index
    %231 = vector.load %arg4[%c0_206, %c42, %c0_207, %c0_208] : memref<1x64x2x2xf32, #tpu.memory_space<vmem>>, vector<1x1x2x2xf32>
    %232 = vector.shape_cast %231 : vector<1x1x2x2xf32> to vector<2x2xf32>
    %233 = vector.shape_cast %230 : vector<2x2xf32> to vector<1x1x2x2xf32>
    tpu.vector_store %arg4[%c0_206, %c42, %c0_207, %c0_208], %233 {strides = array<i32>} : memref<1x64x2x2xf32, #tpu.memory_space<vmem>>, vector<1x1x2x2xf32>,
    %234 = vector.extract_strided_slice %221 {offsets = [0, 6], sizes = [2, 2], strides = [1, 1]} : vector<2x16xf32> to vector<2x2xf32>
    %c0_209 = arith.constant 0 : index
    %c46 = arith.constant 46 : index
    %c0_210 = arith.constant 0 : index
    %c0_211 = arith.constant 0 : index
    %235 = vector.load %arg4[%c0_209, %c46, %c0_210, %c0_211] : memref<1x64x2x2xf32, #tpu.memory_space<vmem>>, vector<1x1x2x2xf32>
    %236 = vector.shape_cast %235 : vector<1x1x2x2xf32> to vector<2x2xf32>
    %237 = vector.shape_cast %234 : vector<2x2xf32> to vector<1x1x2x2xf32>
    tpu.vector_store %arg4[%c0_209, %c46, %c0_210, %c0_211], %237 {strides = array<i32>} : memref<1x64x2x2xf32, #tpu.memory_space<vmem>>, vector<1x1x2x2xf32>,
    %238 = vector.extract_strided_slice %221 {offsets = [0, 8], sizes = [2, 2], strides = [1, 1]} : vector<2x16xf32> to vector<2x2xf32>
    %c0_212 = arith.constant 0 : index
    %c35 = arith.constant 35 : index
    %c0_213 = arith.constant 0 : index
    %c0_214 = arith.constant 0 : index
    %239 = vector.load %arg4[%c0_212, %c35, %c0_213, %c0_214] : memref<1x64x2x2xf32, #tpu.memory_space<vmem>>, vector<1x1x2x2xf32>
    %240 = vector.shape_cast %239 : vector<1x1x2x2xf32> to vector<2x2xf32>
    %241 = vector.shape_cast %238 : vector<2x2xf32> to vector<1x1x2x2xf32>
    tpu.vector_store %arg4[%c0_212, %c35, %c0_213, %c0_214], %241 {strides = array<i32>} : memref<1x64x2x2xf32, #tpu.memory_space<vmem>>, vector<1x1x2x2xf32>,
    %242 = vector.extract_strided_slice %221 {offsets = [0, 10], sizes = [2, 2], strides = [1, 1]} : vector<2x16xf32> to vector<2x2xf32>
    %c0_215 = arith.constant 0 : index
    %c39 = arith.constant 39 : index
    %c0_216 = arith.constant 0 : index
    %c0_217 = arith.constant 0 : index
    %243 = vector.load %arg4[%c0_215, %c39, %c0_216, %c0_217] : memref<1x64x2x2xf32, #tpu.memory_space<vmem>>, vector<1x1x2x2xf32>
    %244 = vector.shape_cast %243 : vector<1x1x2x2xf32> to vector<2x2xf32>
    %245 = vector.shape_cast %242 : vector<2x2xf32> to vector<1x1x2x2xf32>
    tpu.vector_store %arg4[%c0_215, %c39, %c0_216, %c0_217], %245 {strides = array<i32>} : memref<1x64x2x2xf32, #tpu.memory_space<vmem>>, vector<1x1x2x2xf32>,
    %246 = vector.extract_strided_slice %221 {offsets = [0, 12], sizes = [2, 2], strides = [1, 1]} : vector<2x16xf32> to vector<2x2xf32>
    %c0_218 = arith.constant 0 : index
    %c43 = arith.constant 43 : index
    %c0_219 = arith.constant 0 : index
    %c0_220 = arith.constant 0 : index
    %247 = vector.load %arg4[%c0_218, %c43, %c0_219, %c0_220] : memref<1x64x2x2xf32, #tpu.memory_space<vmem>>, vector<1x1x2x2xf32>
    %248 = vector.shape_cast %247 : vector<1x1x2x2xf32> to vector<2x2xf32>
    %249 = vector.shape_cast %246 : vector<2x2xf32> to vector<1x1x2x2xf32>
    tpu.vector_store %arg4[%c0_218, %c43, %c0_219, %c0_220], %249 {strides = array<i32>} : memref<1x64x2x2xf32, #tpu.memory_space<vmem>>, vector<1x1x2x2xf32>,
    %250 = vector.extract_strided_slice %221 {offsets = [0, 14], sizes = [2, 2], strides = [1, 1]} : vector<2x16xf32> to vector<2x2xf32>
    %c0_221 = arith.constant 0 : index
    %c47 = arith.constant 47 : index
    %c0_222 = arith.constant 0 : index
    %c0_223 = arith.constant 0 : index
    %251 = vector.load %arg4[%c0_221, %c47, %c0_222, %c0_223] : memref<1x64x2x2xf32, #tpu.memory_space<vmem>>, vector<1x1x2x2xf32>
    %252 = vector.shape_cast %251 : vector<1x1x2x2xf32> to vector<2x2xf32>
    %253 = vector.shape_cast %250 : vector<2x2xf32> to vector<1x1x2x2xf32>
    tpu.vector_store %arg4[%c0_221, %c47, %c0_222, %c0_223], %253 {strides = array<i32>} : memref<1x64x2x2xf32, #tpu.memory_space<vmem>>, vector<1x1x2x2xf32>,
    %c7_224 = arith.constant 7 : index
    %c0_225 = arith.constant 0 : index
    %254 = tpu.strided_load %arg7[%c7_224, %c0_225] {strides = array<i32: 8, 1>} : memref<16x16xf32, #tpu.memory_space<vmem>>, vector<2x16xf32>
    %255 = vector.extract_strided_slice %254 {offsets = [0, 0], sizes = [2, 2], strides = [1, 1]} : vector<2x16xf32> to vector<2x2xf32>
    %c0_226 = arith.constant 0 : index
    %c50 = arith.constant 50 : index
    %c0_227 = arith.constant 0 : index
    %c0_228 = arith.constant 0 : index
    %256 = vector.load %arg4[%c0_226, %c50, %c0_227, %c0_228] : memref<1x64x2x2xf32, #tpu.memory_space<vmem>>, vector<1x1x2x2xf32>
    %257 = vector.shape_cast %256 : vector<1x1x2x2xf32> to vector<2x2xf32>
    %258 = vector.shape_cast %255 : vector<2x2xf32> to vector<1x1x2x2xf32>
    tpu.vector_store %arg4[%c0_226, %c50, %c0_227, %c0_228], %258 {strides = array<i32>} : memref<1x64x2x2xf32, #tpu.memory_space<vmem>>, vector<1x1x2x2xf32>,
    %259 = vector.extract_strided_slice %254 {offsets = [0, 2], sizes = [2, 2], strides = [1, 1]} : vector<2x16xf32> to vector<2x2xf32>
    %c0_229 = arith.constant 0 : index
    %c54 = arith.constant 54 : index
    %c0_230 = arith.constant 0 : index
    %c0_231 = arith.constant 0 : index
    %260 = vector.load %arg4[%c0_229, %c54, %c0_230, %c0_231] : memref<1x64x2x2xf32, #tpu.memory_space<vmem>>, vector<1x1x2x2xf32>
    %261 = vector.shape_cast %260 : vector<1x1x2x2xf32> to vector<2x2xf32>
    %262 = vector.shape_cast %259 : vector<2x2xf32> to vector<1x1x2x2xf32>
    tpu.vector_store %arg4[%c0_229, %c54, %c0_230, %c0_231], %262 {strides = array<i32>} : memref<1x64x2x2xf32, #tpu.memory_space<vmem>>, vector<1x1x2x2xf32>,
    %263 = vector.extract_strided_slice %254 {offsets = [0, 4], sizes = [2, 2], strides = [1, 1]} : vector<2x16xf32> to vector<2x2xf32>
    %c0_232 = arith.constant 0 : index
    %c58 = arith.constant 58 : index
    %c0_233 = arith.constant 0 : index
    %c0_234 = arith.constant 0 : index
    %264 = vector.load %arg4[%c0_232, %c58, %c0_233, %c0_234] : memref<1x64x2x2xf32, #tpu.memory_space<vmem>>, vector<1x1x2x2xf32>
    %265 = vector.shape_cast %264 : vector<1x1x2x2xf32> to vector<2x2xf32>
    %266 = vector.shape_cast %263 : vector<2x2xf32> to vector<1x1x2x2xf32>
    tpu.vector_store %arg4[%c0_232, %c58, %c0_233, %c0_234], %266 {strides = array<i32>} : memref<1x64x2x2xf32, #tpu.memory_space<vmem>>, vector<1x1x2x2xf32>,
    %267 = vector.extract_strided_slice %254 {offsets = [0, 6], sizes = [2, 2], strides = [1, 1]} : vector<2x16xf32> to vector<2x2xf32>
    %c0_235 = arith.constant 0 : index
    %c62 = arith.constant 62 : index
    %c0_236 = arith.constant 0 : index
    %c0_237 = arith.constant 0 : index
    %268 = vector.load %arg4[%c0_235, %c62, %c0_236, %c0_237] : memref<1x64x2x2xf32, #tpu.memory_space<vmem>>, vector<1x1x2x2xf32>
    %269 = vector.shape_cast %268 : vector<1x1x2x2xf32> to vector<2x2xf32>
    %270 = vector.shape_cast %267 : vector<2x2xf32> to vector<1x1x2x2xf32>
    tpu.vector_store %arg4[%c0_235, %c62, %c0_236, %c0_237], %270 {strides = array<i32>} : memref<1x64x2x2xf32, #tpu.memory_space<vmem>>, vector<1x1x2x2xf32>,
    %271 = vector.extract_strided_slice %254 {offsets = [0, 8], sizes = [2, 2], strides = [1, 1]} : vector<2x16xf32> to vector<2x2xf32>
    %c0_238 = arith.constant 0 : index
    %c51 = arith.constant 51 : index
    %c0_239 = arith.constant 0 : index
    %c0_240 = arith.constant 0 : index
    %272 = vector.load %arg4[%c0_238, %c51, %c0_239, %c0_240] : memref<1x64x2x2xf32, #tpu.memory_space<vmem>>, vector<1x1x2x2xf32>
    %273 = vector.shape_cast %272 : vector<1x1x2x2xf32> to vector<2x2xf32>
    %274 = vector.shape_cast %271 : vector<2x2xf32> to vector<1x1x2x2xf32>
    tpu.vector_store %arg4[%c0_238, %c51, %c0_239, %c0_240], %274 {strides = array<i32>} : memref<1x64x2x2xf32, #tpu.memory_space<vmem>>, vector<1x1x2x2xf32>,
    %275 = vector.extract_strided_slice %254 {offsets = [0, 10], sizes = [2, 2], strides = [1, 1]} : vector<2x16xf32> to vector<2x2xf32>
    %c0_241 = arith.constant 0 : index
    %c55 = arith.constant 55 : index
    %c0_242 = arith.constant 0 : index
    %c0_243 = arith.constant 0 : index
    %276 = vector.load %arg4[%c0_241, %c55, %c0_242, %c0_243] : memref<1x64x2x2xf32, #tpu.memory_space<vmem>>, vector<1x1x2x2xf32>
    %277 = vector.shape_cast %276 : vector<1x1x2x2xf32> to vector<2x2xf32>
    %278 = vector.shape_cast %275 : vector<2x2xf32> to vector<1x1x2x2xf32>
    tpu.vector_store %arg4[%c0_241, %c55, %c0_242, %c0_243], %278 {strides = array<i32>} : memref<1x64x2x2xf32, #tpu.memory_space<vmem>>, vector<1x1x2x2xf32>,
    %279 = vector.extract_strided_slice %254 {offsets = [0, 12], sizes = [2, 2], strides = [1, 1]} : vector<2x16xf32> to vector<2x2xf32>
    %c0_244 = arith.constant 0 : index
    %c59 = arith.constant 59 : index
    %c0_245 = arith.constant 0 : index
    %c0_246 = arith.constant 0 : index
    %280 = vector.load %arg4[%c0_244, %c59, %c0_245, %c0_246] : memref<1x64x2x2xf32, #tpu.memory_space<vmem>>, vector<1x1x2x2xf32>
    %281 = vector.shape_cast %280 : vector<1x1x2x2xf32> to vector<2x2xf32>
    %282 = vector.shape_cast %279 : vector<2x2xf32> to vector<1x1x2x2xf32>
    tpu.vector_store %arg4[%c0_244, %c59, %c0_245, %c0_246], %282 {strides = array<i32>} : memref<1x64x2x2xf32, #tpu.memory_space<vmem>>, vector<1x1x2x2xf32>,
    %283 = vector.extract_strided_slice %254 {offsets = [0, 14], sizes = [2, 2], strides = [1, 1]} : vector<2x16xf32> to vector<2x2xf32>
    %c0_247 = arith.constant 0 : index
    %c63 = arith.constant 63 : index
    %c0_248 = arith.constant 0 : index
    %c0_249 = arith.constant 0 : index
    %284 = vector.load %arg4[%c0_247, %c63, %c0_248, %c0_249] : memref<1x64x2x2xf32, #tpu.memory_space<vmem>>, vector<1x1x2x2xf32>
    %285 = vector.shape_cast %284 : vector<1x1x2x2xf32> to vector<2x2xf32>
    %286 = vector.shape_cast %283 : vector<2x2xf32> to vector<1x1x2x2xf32>
    tpu.vector_store %arg4[%c0_247, %c63, %c0_248, %c0_249], %286 {strides = array<i32>} : memref<1x64x2x2xf32, #tpu.memory_space<vmem>>, vector<1x1x2x2xf32>,
    return
  }
  func.func @transform_0(%arg0: i32, %arg1: i32, %arg2: i32) -> (i32, i32, i32, i32) {
    %c0_i32 = arith.constant 0 : i32
    %c0_i32_0 = arith.constant 0 : i32
    return %arg0, %arg1, %arg2, %c0_i32 : i32, i32, i32, i32
  }
  func.func @transform_1(%arg0: i32, %arg1: i32, %arg2: i32) -> (i32, i32, i32, i32) {
    %c0_i32 = arith.constant 0 : i32
    %c0_i32_0 = arith.constant 0 : i32
    return %arg0, %arg1, %arg2, %c0_i32 : i32, i32, i32, i32
  }
}

</mosaic_0001>

<bundles_post_ra>
// kernel: tpu_custom_call.1
= control target key start
LH: loop header
LB: loop body
LE: loop exit
PB: predicated region body
PF: predicated region fallthrough
CT: control target
= control target key end

     0   :  { %6 = vsyncpa [#allocation6], 0  ;;  %s1355_s0 = inlined_call_operand.hbm [shape: f32[2,4,16,16], index: 0, kind: input, shape index: {}]   ;;  %s1356_s1 = inlined_call_operand.vmem [shape: f32[2,256,2,2], index: 1, kind: output, shape index: {}]  }
   0x1   :  { %8 = vsyncpa [#allocation6 + $0x1], 0  ;;  %s991_s6 = smov 0   ;;  %s993_s7 = smov 0  }
   0x2   :  { %s995_s8 = smov 0   ;;  %s997_s9 = smov 0  }
   0x3   :  { %s999_s10 = smov 0   ;;  %s1001_s11 = smov 0  }
   0x4   :  { %s1003_s12 = smov 0   ;;  %s1005_s13 = smov 0  }
   0x5 LB: > { %s715_s14 = sadd.s32 4294967295, %s970_s13   ;;  %s29_s15 = sadd.s32 1, %s962_s11  ;;  %s970_s13 = sphi %s1005_s13, %s14_s13   ;;  %s966_s12 = sphi %s1003_s12, %s1365_s12   ;;  %s962_s11 = sphi %s1001_s11, %s1364_s11   ;;  %s958_s10 = sphi %s999_s10, %s1363_s10   ;;  %s954_s9 = sphi %s997_s9, %s1362_s9   ;;  %s950_s8 = sphi %s995_s8, %s1361_s8   ;;  %s946_s7 = sphi %s993_s7, %s1360_s7   ;;  %s942_s6 = sphi %s991_s6, %s1359_s6  }
   0x6   : > { %p31_p0 = scmp.ge.s32.totalorder %s29_s15, 4  ;;  %s33_s16 = sadd.s32 1, %s966_s12 }
   0x7   : > { %s44_s17 = sadd.s32 1, %s950_s8  ;;  %p51_p1 = scmp.ne.s32.totalorder %s950_s8, %s946_s7 }
   0x8   : > { %s1367_s15 = smov (%p31_p0, %s29_s15), 0  ;;  %s1369_s16 = smov (!%p31_p0, %s33_s16), %s966_s12 }
   0x9   : > { %s38_s18 = ssub.s32 %s962_s11, %s1367_s15  ;;  %p52_p2 = scmp.eq.s32.totalorder %s970_s13, 0 }
   0xa   : > { %p35_p3 = scmp.ge.s32.totalorder %s1369_s16, 2  ;;  %p57_p4 = scmp.ne.s32.totalorder %s946_s7, %s942_s6 }
   0xb   : > { %p1042_p5 = por %p52_p2, %p51_p1  ;;  %p58_p6 = scmp.eq.s32.totalorder %s715_s14, 0 }
   0xc   : > { %s1371_s16 = smov (%p35_p3, %s1369_s16), 0  ;;  %p799_p8 = scmp.lt.s32.totalorder %s970_s13, 8 }
   0xd   : > { %p1048_p7 = por %p58_p6, %p57_p4  ;;  %s37_s21 = ssub.s32 %s966_s12, %s1371_s16 }
   0xe   : > { %s39_s22 = sor.u32 %s38_s18, %s37_s21  ;;  %s111_s23 = sand.u32 1, %s950_s8  }
   0xf   : > { %p42_p9 = scmp.eq.s32.totalorder %s39_s22, 0  ;;  %s719_s24 = sshll.u32 %s111_s23, 4 }
  0x10   : > { %s720_s25 = sshll.u32 %s962_s11, 1  ;;  %s721_s27 = sshll.u32 %s966_s12, 3 }
  0x11   : > { %s1058_s26 = scalar_select %p42_p9, %s950_s8, %s44_s17  }
  0x12   : > { %s122_s28 = sadd.s32 %s721_s27, %s720_s25  ;;  %s115_s29 = scalar_lea.vmem [#allocation5], %s719_s24 }
  0x13   : > { %s127_s30 = sshll.u32 %s115_s29, 4  ;;  %s722_s2 = sshll.u32 %s122_s28, 3  ;;  %s128_s30 = int_to_ptr.vmem [resolvable:$true] %s127_s30 }
  0x14   : > { %s124_s5 = scalar_lea.hbm %s1355_s0, %s722_s2  ;;  %p796_p10 = pnand %p799_p8, %p1042_p5 }
  0x15   : > { %s125_s6 = sshll.u32 %s124_s5, 4  ;;  %p723_p11 = scmp.ge.s32.totalorder %s970_s13, 1  ;;  %s126_s6 = int_to_ptr.hbm [resolvable:$true] %s125_s6 }
  0x16   : > { %s112_s14 = scalar_lea.sflag [#allocation6], %s111_s23  ;;  %s972_s17 = smov 128  }
  0x17   : > { %s973_s18 = smov 8   ;;  %p135_p12 = scmp.lt.s32.totalorder %s970_s13, 9 }
  0x18   : > { %798 = dma.hbm_to_vmem [thread:$0]  (!%p796_p10), %s126_s6, 256, %s128_s30, %s112_s14, %s972_s17, %s972_s17, %s973_s18  }
  0x19   : > { %p136_p13 = pnand %p723_p11, %p135_p12 }
  0x1a   : > { %s141_s21 = sand.u32 (!%p136_p13), 1, %s946_s7  }
  0x1b   : > { %139 = sbr.rel (%p136_p13) target bundleno = 717 (0x2cd), region = 24  ;;  %s724_s22 = sshll.u32 (!%p136_p13), %s141_s21, 4 }
  0x1c   : > { %s142_s24 = scalar_lea.sflag (!%p136_p13), [#allocation6], %s141_s21  ;;  %s145_s25 = scalar_lea.vmem (!%p136_p13), [#allocation5], %s724_s22 }
  0x20   : > { %937 = dma.done.wait (%p1048_p7), %s142_s24, 256  }
  0x21   : > { %939 = vsyncadd (%p1048_p7), %s142_s24, 4294967040  ;;  %v186_v0 = vld [vmem:[%s145_s25] sm:$0xff]  ;;  %v187_v1 = vld [vmem:[%s145_s25 + $0x8] sm:$0xff]  ;;  %vm220_vm0 = vcmask 130048   ;;  %vm224_vm1 = vcmask 123904   ;;  %s725_s19 = sshll.u32 %s954_s9, 6 }
  0x22   : > { %188 = vxpose.xlu0.b32.start [1/2] (short) (narrow) %v186_v0, 16  ;;  %p174_p0 = scmp.lt.s32.totalorder %s958_s10, 1  ;;  %p176_p1 = scmp.lt.s32.totalorder %s725_s19, 255  ;;  %vm284_vm2 = vcmask 9216  }
  0x23   : > { %s974_s9 = smov 120   ;;  %s976_s2 = smov 126  }
  0x24   : > { %s1373_s10 = smov (!%p174_p0, %s958_s10), 1  ;;  %s1375_s19 = smov (!%p176_p1, %s725_s19), 255 }
  0x25   : > { %s726_s20 = sshll.u32 %s1373_s10, 8  ;;  %s975_s10 = smov 122  }
  0x26   : > { %s182_s23 = sadd.s32 %s726_s20, %s1375_s19  ;;  %s977_s3 = smov 124  }
  0x27   : > { %s727_s27 = sshll.u32 %s182_s23, 1  ;;  %s978_s4 = smov 118  }
  0x28   : > { %s1085_s30 = scalar_lea.vmem %s1356_s1, %s727_s27  ;;  %s979_s5 = smov 114  }
  0x29   : > { %s980_s6 = smov 116  }
  0x2a   : > { %189 = vxpose.xlu0.b32.end [2/2] (short) (narrow) %v187_v1, 16 }
  0xc6   : > { %v204_v2 = vpop.trf.xlu0 }
  0xc7   : > { %221 = vst.msk [vmem:[#allocation2] sm:$0xff] %vm220_vm0, %v204_v2 }
  0xce   : > { %v205_v3 = vpop.trf.xlu0 }
  0xcf   : > { %222 = vst.msk [vmem:[#allocation2 + $0x8] sm:$0xff] %vm220_vm0, %v205_v3 }
  0xd6   : > { %v223_v4 = vld [vmem:[#allocation2] ss:$8 sm:$0x3]  ;;  %v227_v5 = vld [vmem:[#allocation2 + $0x1] ss:$8 sm:$0x3] }
  0xd7   : > { %v230_v6 = vld [vmem:[#allocation2 + $0x2] ss:$8 sm:$0x3]  ;;  %v233_v7 = vld [vmem:[#allocation2 + $0x3] ss:$8 sm:$0x3] }
  0xd8   : > { %225 = vst.msk [vmem:[#allocation3] sm:$0x3] %vm224_vm1, %v223_v4  ;;  %v236_v8 = vld [vmem:[#allocation2 + $0x4] ss:$8 sm:$0x3] }
  0xd9   : > { %228 = vst.msk [vmem:[#allocation3 + $0x2] sm:$0x3] %vm224_vm1, %v227_v5  ;;  %v239_v9 = vld [vmem:[#allocation2 + $0x5] ss:$8 sm:$0x3] }
  0xda   : > { %231 = vst.msk [vmem:[#allocation3 + $0x4] sm:$0x3] %vm224_vm1, %v230_v6  ;;  %v242_v10 = vld [vmem:[#allocation2 + $0x6] ss:$8 sm:$0x3] }
  0xdb   : > { %234 = vst.msk [vmem:[#allocation3 + $0x6] sm:$0x3] %vm224_vm1, %v233_v7  ;;  %v245_v11 = vld [vmem:[#allocation2 + $0x7] ss:$8 sm:$0x3] }
  0xdc   : > { %237 = vst.msk [vmem:[#allocation3 + $0x8] sm:$0x3] %vm224_vm1, %v236_v8 }
  0xdd   : > { %240 = vst.msk [vmem:[#allocation3 + $0xa] sm:$0x3] %vm224_vm1, %v239_v9 }
  0xde   : > { %243 = vst.msk [vmem:[#allocation3 + $0xc] sm:$0x3] %vm224_vm1, %v242_v10 }
  0xdf   : > { %246 = vst.msk [vmem:[#allocation3 + $0xe] sm:$0x3] %vm224_vm1, %v245_v11 }
  0xe2   : > { %v247_v12 = vld [vmem:[#allocation3] sm:$0xff] }
  0xe3   : > { %249 = vxpose.xlu1.b32.start [1/2] (short) (narrow) %v247_v12, 16 }
  0xe6   : > { %v248_v13 = vld [vmem:[#allocation3 + $0x8] sm:$0xff] }
  0xeb   : > { %250 = vxpose.xlu1.b32.end [2/2] (short) (narrow) %v248_v13, 16 }
 0x187   : > { %v265_v14 = vpop.trf.xlu1 }
 0x188   : > { %281 = vst.msk [vmem:[#allocation4] sm:$0xff] %vm220_vm0, %v265_v14 }
 0x18f   : > { %v266_v15 = vpop.trf.xlu1 }
 0x190   : > { %282 = vst.msk [vmem:[#allocation4 + $0x8] sm:$0xff] %vm220_vm0, %v266_v15 }
 0x197   : > { %v283_v16 = vld [vmem:[#allocation4] ss:$8 sm:$0x3]  ;;  %v1087_v17 = vld [vmem:[#allocation4 + $0x2] ss:$8 sm:$0x3] }
 0x198   : > { %302 = vrot.lane.b32.xlu1 %v283_v16, %s974_s9  ;;  %285 = vst.msk [vmem:[%s1085_s30] sm:$0x3] %vm284_vm2, %v283_v16  ;;  %297 = vrot.lane.b32.xlu0 %v283_v16, %s975_s10  ;;  %v1093_v18 = vld [vmem:[#allocation4 + $0x3] ss:$8 sm:$0x3] }
 0x199   : > { %287 = vrot.lane.b32.xlu2 %v283_v16, %s976_s2  ;;  %743 = vst.msk [vmem:[%s1085_s30 + $0x40] sm:$0x3] %vm284_vm2, %v1087_v17  ;;  %v1099_v19 = vld [vmem:[#allocation4 + $0x4] ss:$8 sm:$0x3] }
 0x19a   : > { %751 = vst.msk [vmem:[%s1085_s30 + $0x60] sm:$0x3] %vm284_vm2, %v1093_v18  ;;  %v323_v20 = vld [vmem:[#allocation4 + $0x1] ss:$8 sm:$0x3] }
 0x19b   : > { %759 = vst.msk [vmem:[%s1085_s30 + $0x4] sm:$0x3] %vm284_vm2, %v1099_v19  ;;  %v1107_v21 = vld [vmem:[#allocation4 + $0x5] ss:$8 sm:$0x3] }
 0x19c   : > { %735 = vst.msk [vmem:[%s1085_s30 + $0x20] sm:$0x3] %vm284_vm2, %v323_v20  ;;  %v1111_v22 = vld [vmem:[#allocation4 + $0x6] ss:$8 sm:$0x3] }
 0x19d   : > { %767 = vst.msk [vmem:[%s1085_s30 + $0x24] sm:$0x3] %vm284_vm2, %v1107_v21  ;;  %v1116_v23 = vld [vmem:[#allocation4 + $0x7] ss:$8 sm:$0x3] }
 0x19e   : > { %775 = vst.msk [vmem:[%s1085_s30 + $0x44] sm:$0x3] %vm284_vm2, %v1111_v22 }
 0x19f   : > { %783 = vst.msk [vmem:[%s1085_s30 + $0x64] sm:$0x3] %vm284_vm2, %v1116_v23 }
 0x1a0   : > { %377 = vrot.lane.b32.xlu1 %v1087_v17, %s975_s10  ;;  %407 = vrot.lane.b32.xlu0 %v1093_v18, %s976_s2 }
 0x1a1   : > { %292 = vrot.lane.b32.xlu2 %v283_v16, %s977_s3 }
 0x1a8   : > { %387 = vrot.lane.b32.xlu1 %v1087_v17, %s978_s4  ;;  %422 = vrot.lane.b32.xlu0 %v1093_v18, %s974_s9 }
 0x1a9   : > { %307 = vrot.lane.b32.xlu2 %v283_v16, %s978_s4 }
 0x1b0   : > { %397 = vrot.lane.b32.xlu1 %v1087_v17, %s979_s5  ;;  %437 = vrot.lane.b32.xlu0 %v1093_v18, %s979_s5 }
 0x1b1   : > { %312 = vrot.lane.b32.xlu2 %v283_v16, %s980_s6 }
 0x1b8   : > { %417 = vrot.lane.b32.xlu1 %v1093_v18, %s975_s10  ;;  %457 = vrot.lane.b32.xlu0 %v1099_v19, %s975_s10 }
 0x1b9   : > { %317 = vrot.lane.b32.xlu2 %v283_v16, %s979_s5 }
 0x1c0   : > { %432 = vrot.lane.b32.xlu1 %v1093_v18, %s980_s6  ;;  %472 = vrot.lane.b32.xlu0 %v1099_v19, %s980_s6 }
 0x1c1   : > { %327 = vrot.lane.b32.xlu2 %v323_v20, %s976_s2 }
 0x1c8   : > { %452 = vrot.lane.b32.xlu1 %v1099_v19, %s977_s3  ;;  %492 = vrot.lane.b32.xlu0 %v1107_v21, %s977_s3 }
 0x1c9   : > { %332 = vrot.lane.b32.xlu2 %v323_v20, %s977_s3 }
 0x1d0   : > { %467 = vrot.lane.b32.xlu1 %v1099_v19, %s978_s4  ;;  %507 = vrot.lane.b32.xlu0 %v1107_v21, %s978_s4 }
 0x1d1   : > { %337 = vrot.lane.b32.xlu2 %v323_v20, %s975_s10 }
 0x1d8   : > { %487 = vrot.lane.b32.xlu1 %v1107_v21, %s976_s2  ;;  %527 = vrot.lane.b32.xlu0 %v1111_v22, %s976_s2 }
 0x1d9   : > { %342 = vrot.lane.b32.xlu2 %v323_v20, %s974_s9 }
 0x1e0   : > { %502 = vrot.lane.b32.xlu1 %v1107_v21, %s974_s9  ;;  %542 = vrot.lane.b32.xlu0 %v1111_v22, %s974_s9 }
 0x1e1   : > { %347 = vrot.lane.b32.xlu2 %v323_v20, %s978_s4 }
 0x1e8   : > { %517 = vrot.lane.b32.xlu1 %v1107_v21, %s979_s5  ;;  %557 = vrot.lane.b32.xlu0 %v1111_v22, %s979_s5 }
 0x1e9   : > { %352 = vrot.lane.b32.xlu2 %v323_v20, %s980_s6 }
 0x1f0   : > { %537 = vrot.lane.b32.xlu1 %v1111_v22, %s975_s10  ;;  %577 = vrot.lane.b32.xlu0 %v1116_v23, %s975_s10 }
 0x1f1   : > { %357 = vrot.lane.b32.xlu2 %v323_v20, %s979_s5 }
 0x1f3   : > { %v288_v24 = vpop.permute.xlu2 %287 }
 0x1f4   : > { %728 = vst.msk [vmem:[%s1085_s30 + $0x8] sm:$0x3] %vm284_vm2, %v288_v24 }
 0x1f8   : > { %552 = vrot.lane.b32.xlu1 %v1111_v22, %s980_s6  ;;  %592 = vrot.lane.b32.xlu0 %v1116_v23, %s980_s6 }
 0x1f9   : > { %367 = vrot.lane.b32.xlu2 %v1087_v17, %s976_s2 }
 0x1fb   : > { %v293_v25 = vpop.permute.xlu2 %292 }
 0x1fc   : > { %729 = vst.msk [vmem:[%s1085_s30 + $0x10] sm:$0x3] %vm284_vm2, %v293_v25 }
 0x200   : > { %572 = vrot.lane.b32.xlu1 %v1116_v23, %s977_s3 }
 0x201   : > { %372 = vrot.lane.b32.xlu2 %v1087_v17, %s977_s3 }
 0x203   : > { %v308_v26 = vpop.permute.xlu2 %307 }
 0x204   : > { %732 = vst.msk [vmem:[%s1085_s30 + $0xa] sm:$0x3] %vm284_vm2, %v308_v26 }
 0x208   : > { %587 = vrot.lane.b32.xlu1 %v1116_v23, %s978_s4 }
 0x209   : > { %382 = vrot.lane.b32.xlu2 %v1087_v17, %s974_s9 }
 0x20a   : > { %v303_v27 = vpop.permute.xlu1 %302  ;;  %v298_v28 = vpop.permute.xlu0 %297 }
 0x20b   : > { %731 = vst.msk [vmem:[%s1085_s30 + $0x2] sm:$0x3] %vm284_vm2, %v303_v27  ;;  %v313_v29 = vpop.permute.xlu2 %312 }
 0x20c   : > { %730 = vst.msk [vmem:[%s1085_s30 + $0x18] sm:$0x3] %vm284_vm2, %v298_v28 }
 0x20d   : > { %733 = vst.msk [vmem:[%s1085_s30 + $0x12] sm:$0x3] %vm284_vm2, %v313_v29 }
 0x211   : > { %392 = vrot.lane.b32.xlu2 %v1087_v17, %s980_s6 }
 0x212   : > { %v378_v30 = vpop.permute.xlu1 %377  ;;  %v408_v31 = vpop.permute.xlu0 %407 }
 0x213   : > { %746 = vst.msk [vmem:[%s1085_s30 + $0x58] sm:$0x3] %vm284_vm2, %v378_v30  ;;  %v318_v32 = vpop.permute.xlu2 %317 }
 0x214   : > { %752 = vst.msk [vmem:[%s1085_s30 + $0x68] sm:$0x3] %vm284_vm2, %v408_v31 }
 0x215   : > { %734 = vst.msk [vmem:[%s1085_s30 + $0x1a] sm:$0x3] %vm284_vm2, %v318_v32 }
 0x219   : > { %412 = vrot.lane.b32.xlu2 %v1093_v18, %s977_s3 }
 0x21a   : > { %v388_v33 = vpop.permute.xlu1 %387  ;;  %v423_v34 = vpop.permute.xlu0 %422 }
 0x21b   : > { %748 = vst.msk [vmem:[%s1085_s30 + $0x4a] sm:$0x3] %vm284_vm2, %v388_v33  ;;  %v328_v35 = vpop.permute.xlu2 %327 }
 0x21c   : > { %755 = vst.msk [vmem:[%s1085_s30 + $0x62] sm:$0x3] %vm284_vm2, %v423_v34 }
 0x21d   : > { %736 = vst.msk [vmem:[%s1085_s30 + $0x28] sm:$0x3] %vm284_vm2, %v328_v35 }
 0x221   : > { %427 = vrot.lane.b32.xlu2 %v1093_v18, %s978_s4 }
 0x222   : > { %v398_v36 = vpop.permute.xlu1 %397  ;;  %v438_v37 = vpop.permute.xlu0 %437 }
 0x223   : > { %750 = vst.msk [vmem:[%s1085_s30 + $0x5a] sm:$0x3] %vm284_vm2, %v398_v36  ;;  %v333_v38 = vpop.permute.xlu2 %332 }
 0x224   : > { %758 = vst.msk [vmem:[%s1085_s30 + $0x7a] sm:$0x3] %vm284_vm2, %v438_v37 }
 0x225   : > { %737 = vst.msk [vmem:[%s1085_s30 + $0x30] sm:$0x3] %vm284_vm2, %v333_v38 }
 0x229   : > { %447 = vrot.lane.b32.xlu2 %v1099_v19, %s976_s2 }
 0x22a   : > { %v418_v39 = vpop.permute.xlu1 %417  ;;  %v458_v40 = vpop.permute.xlu0 %457 }
 0x22b   : > { %754 = vst.msk [vmem:[%s1085_s30 + $0x78] sm:$0x3] %vm284_vm2, %v418_v39  ;;  %v338_v41 = vpop.permute.xlu2 %337 }
 0x22c   : > { %762 = vst.msk [vmem:[%s1085_s30 + $0x1c] sm:$0x3] %vm284_vm2, %v458_v40 }
 0x22d   : > { %738 = vst.msk [vmem:[%s1085_s30 + $0x38] sm:$0x3] %vm284_vm2, %v338_v41 }
 0x231   : > { %462 = vrot.lane.b32.xlu2 %v1099_v19, %s974_s9 }
 0x232   : > { %v433_v42 = vpop.permute.xlu1 %432  ;;  %v473_v43 = vpop.permute.xlu0 %472 }
 0x233   : > { %757 = vst.msk [vmem:[%s1085_s30 + $0x72] sm:$0x3] %vm284_vm2, %v433_v42  ;;  %v343_v44 = vpop.permute.xlu2 %342 }
 0x234   : > { %765 = vst.msk [vmem:[%s1085_s30 + $0x16] sm:$0x3] %vm284_vm2, %v473_v43 }
 0x235   : > { %739 = vst.msk [vmem:[%s1085_s30 + $0x22] sm:$0x3] %vm284_vm2, %v343_v44 }
 0x239   : > { %477 = vrot.lane.b32.xlu2 %v1099_v19, %s979_s5 }
 0x23a   : > { %v453_v45 = vpop.permute.xlu1 %452  ;;  %v493_v46 = vpop.permute.xlu0 %492 }
 0x23b   : > { %761 = vst.msk [vmem:[%s1085_s30 + $0x14] sm:$0x3] %vm284_vm2, %v453_v45  ;;  %v348_v47 = vpop.permute.xlu2 %347 }
 0x23c   : > { %769 = vst.msk [vmem:[%s1085_s30 + $0x34] sm:$0x3] %vm284_vm2, %v493_v46 }
 0x23d   : > { %740 = vst.msk [vmem:[%s1085_s30 + $0x2a] sm:$0x3] %vm284_vm2, %v348_v47 }
 0x241   : > { %497 = vrot.lane.b32.xlu2 %v1107_v21, %s975_s10 }
 0x242   : > { %v468_v48 = vpop.permute.xlu1 %467  ;;  %v508_v49 = vpop.permute.xlu0 %507 }
 0x243   : > { %764 = vst.msk [vmem:[%s1085_s30 + $0xe] sm:$0x3] %vm284_vm2, %v468_v48  ;;  %v353_v50 = vpop.permute.xlu2 %352 }
 0x244   : > { %772 = vst.msk [vmem:[%s1085_s30 + $0x2e] sm:$0x3] %vm284_vm2, %v508_v49 }
 0x245   : > { %741 = vst.msk [vmem:[%s1085_s30 + $0x32] sm:$0x3] %vm284_vm2, %v353_v50 }
 0x249   : > { %512 = vrot.lane.b32.xlu2 %v1107_v21, %s980_s6 }
 0x24a   : > { %v488_v51 = vpop.permute.xlu1 %487  ;;  %v528_v52 = vpop.permute.xlu0 %527 }
 0x24b   : > { %768 = vst.msk [vmem:[%s1085_s30 + $0x2c] sm:$0x3] %vm284_vm2, %v488_v51  ;;  %v358_v53 = vpop.permute.xlu2 %357 }
 0x24c   : > { %776 = vst.msk [vmem:[%s1085_s30 + $0x4c] sm:$0x3] %vm284_vm2, %v528_v52 }
 0x24d   : > { %742 = vst.msk [vmem:[%s1085_s30 + $0x3a] sm:$0x3] %vm284_vm2, %v358_v53 }
 0x251   : > { %532 = vrot.lane.b32.xlu2 %v1111_v22, %s977_s3 }
 0x252   : > { %v503_v54 = vpop.permute.xlu1 %502  ;;  %v543_v55 = vpop.permute.xlu0 %542 }
 0x253   : > { %771 = vst.msk [vmem:[%s1085_s30 + $0x26] sm:$0x3] %vm284_vm2, %v503_v54  ;;  %v368_v56 = vpop.permute.xlu2 %367 }
 0x254   : > { %779 = vst.msk [vmem:[%s1085_s30 + $0x46] sm:$0x3] %vm284_vm2, %v543_v55 }
 0x255   : > { %744 = vst.msk [vmem:[%s1085_s30 + $0x48] sm:$0x3] %vm284_vm2, %v368_v56 }
 0x259   : > { %547 = vrot.lane.b32.xlu2 %v1111_v22, %s978_s4 }
 0x25a   : > { %v518_v57 = vpop.permute.xlu1 %517  ;;  %v558_v58 = vpop.permute.xlu0 %557 }
 0x25b   : > { %774 = vst.msk [vmem:[%s1085_s30 + $0x3e] sm:$0x3] %vm284_vm2, %v518_v57  ;;  %v373_v59 = vpop.permute.xlu2 %372 }
 0x25c   : > { %782 = vst.msk [vmem:[%s1085_s30 + $0x5e] sm:$0x3] %vm284_vm2, %v558_v58 }
 0x25d   : > { %745 = vst.msk [vmem:[%s1085_s30 + $0x50] sm:$0x3] %vm284_vm2, %v373_v59 }
 0x261   : > { %567 = vrot.lane.b32.xlu2 %v1116_v23, %s976_s2 }
 0x262   : > { %v538_v60 = vpop.permute.xlu1 %537  ;;  %v578_v61 = vpop.permute.xlu0 %577 }
 0x263   : > { %778 = vst.msk [vmem:[%s1085_s30 + $0x5c] sm:$0x3] %vm284_vm2, %v538_v60  ;;  %v383_v62 = vpop.permute.xlu2 %382 }
 0x264   : > { %786 = vst.msk [vmem:[%s1085_s30 + $0x7c] sm:$0x3] %vm284_vm2, %v578_v61 }
 0x265   : > { %747 = vst.msk [vmem:[%s1085_s30 + $0x42] sm:$0x3] %vm284_vm2, %v383_v62 }
 0x269   : > { %582 = vrot.lane.b32.xlu2 %v1116_v23, %s974_s9 }
 0x26a   : > { %v553_v63 = vpop.permute.xlu1 %552  ;;  %v593_v0 = vpop.permute.xlu0 %592 }
 0x26b   : > { %781 = vst.msk [vmem:[%s1085_s30 + $0x56] sm:$0x3] %vm284_vm2, %v553_v63  ;;  %v393_v1 = vpop.permute.xlu2 %392 }
 0x26c   : > { %789 = vst.msk [vmem:[%s1085_s30 + $0x76] sm:$0x3] %vm284_vm2, %v593_v0 }
 0x26d   : > { %749 = vst.msk [vmem:[%s1085_s30 + $0x52] sm:$0x3] %vm284_vm2, %v393_v1 }
 0x271   : > { %597 = vrot.lane.b32.xlu2 %v1116_v23, %s979_s5 }
 0x272   : > { %v573_v2 = vpop.permute.xlu1 %572 }
 0x273   : > { %785 = vst.msk [vmem:[%s1085_s30 + $0x74] sm:$0x3] %vm284_vm2, %v573_v2  ;;  %v413_v3 = vpop.permute.xlu2 %412 }
 0x274   : > { %753 = vst.msk [vmem:[%s1085_s30 + $0x70] sm:$0x3] %vm284_vm2, %v413_v3 }
 0x27a   : > { %v588_v4 = vpop.permute.xlu1 %587 }
 0x27b   : > { %788 = vst.msk [vmem:[%s1085_s30 + $0x6e] sm:$0x3] %vm284_vm2, %v588_v4  ;;  %v428_v5 = vpop.permute.xlu2 %427 }
 0x27c   : > { %756 = vst.msk [vmem:[%s1085_s30 + $0x6a] sm:$0x3] %vm284_vm2, %v428_v5 }
 0x283   : > { %v448_v6 = vpop.permute.xlu2 %447 }
 0x284   : > { %760 = vst.msk [vmem:[%s1085_s30 + $0xc] sm:$0x3] %vm284_vm2, %v448_v6 }
 0x28b   : > { %v463_v7 = vpop.permute.xlu2 %462 }
 0x28c   : > { %763 = vst.msk [vmem:[%s1085_s30 + $0x6] sm:$0x3] %vm284_vm2, %v463_v7 }
 0x293   : > { %v478_v8 = vpop.permute.xlu2 %477 }
 0x294   : > { %766 = vst.msk [vmem:[%s1085_s30 + $0x1e] sm:$0x3] %vm284_vm2, %v478_v8 }
 0x29b   : > { %v498_v9 = vpop.permute.xlu2 %497 }
 0x29c   : > { %770 = vst.msk [vmem:[%s1085_s30 + $0x3c] sm:$0x3] %vm284_vm2, %v498_v9 }
 0x2a3   : > { %v513_v10 = vpop.permute.xlu2 %512 }
 0x2a4   : > { %773 = vst.msk [vmem:[%s1085_s30 + $0x36] sm:$0x3] %vm284_vm2, %v513_v10 }
 0x2ab   : > { %v533_v11 = vpop.permute.xlu2 %532 }
 0x2ac   : > { %777 = vst.msk [vmem:[%s1085_s30 + $0x54] sm:$0x3] %vm284_vm2, %v533_v11 }
 0x2b3   : > { %v548_v12 = vpop.permute.xlu2 %547 }
 0x2b4   : > { %780 = vst.msk [vmem:[%s1085_s30 + $0x4e] sm:$0x3] %vm284_vm2, %v548_v12 }
 0x2bb   : > { %v568_v13 = vpop.permute.xlu2 %567 }
 0x2bc   : > { %784 = vst.msk [vmem:[%s1085_s30 + $0x6c] sm:$0x3] %vm284_vm2, %v568_v13 }
 0x2c3   : > { %v583_v14 = vpop.permute.xlu2 %582 }
 0x2c4   : > { %787 = vst.msk [vmem:[%s1085_s30 + $0x66] sm:$0x3] %vm284_vm2, %v583_v14 }
 0x2cb   : > { %v598_v15 = vpop.permute.xlu2 %597 }
 0x2cc   : > { %790 = vst.msk [vmem:[%s1085_s30 + $0x7e] sm:$0x3] %vm284_vm2, %v598_v15 }
 0x2cd PF: > { %s14_s13 = sadd.s32 1, %s970_s13   ;;  %s1359_s6 = smov %s946_s7 }
 0x2ce   : > { %p11_p2 = scmp.ge.s32.totalorder %s14_s13, 10   ;;  %s1360_s7 = smov %s950_s8 }
 0x2cf   : > { %s1361_s8 = smov %s1058_s26  ;;  %s1362_s9 = smov %s962_s11 }
 0x2d0   : > { %s1363_s10 = smov %s966_s12  ;;  %s1364_s11 = smov %s1367_s15 }
 0x2d1   : > { %s1365_s12 = smov %s1371_s16  ;;  %13 = sbr.rel (!%p11_p2) target bundleno = 5 (0x5), region = 141 }
 0x2d6   :  { %638 = vsyncpa [#allocation6], 1 }
 0x2d7   :  { %640 = vsyncpa [#allocation6 + $0x1], 1 }

</bundles_post_ra>
